<compile_context>
chip_gen: v6e
topology: v6e:2x2x1
jax: 0.10.0
libtpu: 0.0.40
codegen_flags: <defaults>
</compile_context>

<pallas_src>
import functools
import math

import jax
import jax.numpy as jnp
from jax.experimental import pallas as pl
from jax.experimental.pallas import tpu as pltpu


# ------------------------------ helpers ------------------------------------

def _layer_norm(x, g, b, eps):
    mean = jnp.mean(x, axis=-1, keepdims=True)
    var = jnp.mean(jnp.square(x - mean), axis=-1, keepdims=True)
    return (x - mean) * jax.lax.rsqrt(var + eps) * g + b


def _choose_batch_block(batch, seq_len, target_rows=256):
    """Bt*S >= target MXU rows, but keep >=2 parallel blocks for v7x's 2 TCs."""
    bt = max(1, min(batch, -(-target_rows // seq_len)))
    if batch >= 2:
        bt = min(bt, batch // 2)
    bt = max(bt, 1)
    while batch % bt:
        bt -= 1
    return bt


def _block_bytes(shape, dtype):
    """VMEM bytes of one buffered block, padded to the (8, 128) tile."""
    lead = math.prod(shape[:-2]) if len(shape) > 2 else 1
    rows = shape[-2] if len(shape) >= 2 else 1
    cols = shape[-1]
    return (lead * (-(-rows // 8) * 8) * (-(-cols // 128) * 128)
            * jnp.dtype(dtype).itemsize)


# ------------------------------ fused kernel -------------------------------

def _fused_kernel(patches_ref, w_enc_ref, b_enc_ref, pe_ref,
                  wqkv_ref, bqkv_ref, wo_ref, bo_ref, g1_ref, b1_ref,
                  wff1_ref, bff1_ref, wff2_ref, bff2_ref, g2_ref, b2_ref,
                  wdec_ref, bdec_ref,
                  o_ref, h_ref,
                  *, nhead, eps, embed_scale, compute_dtype, approx_recip):
    """One grid step = (one batch block, one encoder layer).

    The (Bt, S, D) activation lives in VMEM scratch `h_ref`, carried across the
    "arbitrary" layer axis.  Layer 0 additionally runs the fused patch-embed
    epilogue; the last layer runs the decoder projection and is the only HBM store.
    """
    layer = pl.program_id(1)
    n_layers = pl.num_programs(1)
    bt, seq, dm = h_ref.shape
    m = bt * seq
    hd = dm // nhead

    def mm(a, w):
        # weights are streamed in their storage dtype (f32 or bf16); cast only the
        # activation operand, accumulate in f32 on the MXU.
        return jnp.dot(a.astype(w.dtype), w, preferred_element_type=jnp.float32)

    # ---- layer 0: patch-embed conv (as matmul) + ReLU + *sqrt(d_model) + PE ----
    @pl.when(layer == 0)
    def _():
        p = patches_ref[...].reshape(m, patches_ref.shape[-1])
        e = jnp.maximum(mm(p, w_enc_ref[...]) + b_enc_ref[...], 0.0) * embed_scale
        h_ref[...] = e.reshape(bt, seq, dm) + pe_ref[...]

    x3 = h_ref[...]                                   # (Bt, S, D) f32
    x2 = x3.reshape(m, dm)

    # ---- self-attention (fused QKV matmul on (Bt*S, D); heads batched over Bt) ----
    qkv = (mm(x2, wqkv_ref[0]) + bqkv_ref[0]).reshape(bt, seq, 3 * dm)
    heads = []
    for hh in range(nhead):
        # 1/sqrt(hd) is pre-folded into the Q projection weights/bias.
        q = qkv[:, :, hh * hd:(hh + 1) * hd].astype(compute_dtype)
        k = qkv[:, :, dm + hh * hd:dm + (hh + 1) * hd].astype(compute_dtype)
        v = qkv[:, :, 2 * dm + hh * hd:2 * dm + (hh + 1) * hd].astype(compute_dtype)
        s = jnp.einsum('bqd,bkd->bqk', q, k, preferred_element_type=jnp.float32)
        s = s - jnp.max(s, axis=-1, keepdims=True)
        p = jnp.exp(s)
        p = p * pl.reciprocal(jnp.sum(p, axis=-1, keepdims=True), approx=approx_recip)
        heads.append(jnp.einsum('bqk,bkd->bqd', p.astype(compute_dtype), v,
                                preferred_element_type=jnp.float32))
    ctx = jnp.concatenate(heads, axis=-1).reshape(m, dm)

    attn = mm(ctx, wo_ref[0]) + bo_ref[0]
    y = _layer_norm(x2 + attn, g1_ref[0], b1_ref[0], eps)      # post-norm 1

    # ---- feed-forward ----
    ff = jnp.maximum(mm(y, wff1_ref[0]) + bff1_ref[0], 0.0)
    ff = mm(ff, wff2_ref[0]) + bff2_ref[0]
    y = _layer_norm(y + ff, g2_ref[0], b2_ref[0], eps)         # post-norm 2

    @pl.when(layer < n_layers - 1)
    def _():
        h_ref[...] = y.reshape(bt, seq, dm)

    # ---- last layer: fused decoder projection; the only HBM store ----
    @pl.when(layer == n_layers - 1)
    def _():
        dec = mm(y, wdec_ref[...]) + bdec_ref[...]
        o_ref[...] = dec.reshape(bt, seq, o_ref.shape[-1]).astype(o_ref.dtype)


def fused_forward(patches, params, *, nhead, eps=1e-5,
                  weights_dtype=jnp.bfloat16, batch_block=None):
    """patches: (B, S, C*16) -> decoder tokens (B, S, C*16); one pallas_call."""
    B, S, Cp = patches.shape
    layers = params["layers"]
    D = params["w_enc"].shape[-1]
    L = layers["w_qkv"].shape[0]
    F = layers["w_ff1"].shape[-1]
    N = params["w_dec"].shape[-1]
    hd = D // nhead
    wd = jnp.dtype(weights_dtype)

    Bt = batch_block or _choose_batch_block(B, S)
    assert B % Bt == 0, (B, Bt)

    # Fold the 1/sqrt(head_dim) attention scale into the Q projection (free in-kernel).
    qscale = 1.0 / math.sqrt(hd)
    w_qkv = layers["w_qkv"].at[:, :, :D].multiply(qscale).astype(wd)
    b_qkv = layers["b_qkv"].at[:, :, :D].multiply(qscale)

    # bf16 (or f32) weight streaming: only the big matmul operands are cast.
    w_enc = params["w_enc"].astype(wd)
    w_dec = params["w_dec"].astype(wd)
    w_o = layers["w_o"].astype(wd)
    w_ff1 = layers["w_ff1"].astype(wd)
    w_ff2 = layers["w_ff2"].astype(wd)

    def const_spec(shape):
        return pl.BlockSpec(shape, lambda i, l, _r=len(shape): (0,) * _r)

    def per_batch_spec(shape):
        return pl.BlockSpec(shape, lambda i, l: (i, 0, 0))

    def per_layer_spec(shape):
        return pl.BlockSpec((1,) + shape, lambda i, l: (l, 0, 0))

    in_specs = [
        per_batch_spec((Bt, S, Cp)),                             # patches
        const_spec((Cp, D)), const_spec((1, D)), const_spec((S, D)),  # w_enc, b_enc, pe
        per_layer_spec((D, 3 * D)), per_layer_spec((1, 3 * D)),  # w_qkv, b_qkv
        per_layer_spec((D, D)), per_layer_spec((1, D)),          # w_o, b_o
        per_layer_spec((1, D)), per_layer_spec((1, D)),          # ln1_g, ln1_b
        per_layer_spec((D, F)), per_layer_spec((1, F)),          # w_ff1, b_ff1
        per_layer_spec((F, D)), per_layer_spec((1, D)),          # w_ff2, b_ff2
        per_layer_spec((1, D)), per_layer_spec((1, D)),          # ln2_g, ln2_b
        const_spec((D, N)), const_spec((1, N)),                  # w_dec, b_dec
    ]

    # VMEM budget derived from the actual (padded, double-buffered) blocks and
    # clamped to 64 MiB so the same config fits v7x's physical VMEM.
    f32 = jnp.float32
    blocks = [((Bt, S, Cp), patches.dtype),
              ((Cp, D), wd), ((1, D), f32), ((S, D), f32),
              ((1, D, 3 * D), wd), ((1, 1, 3 * D), f32),
              ((1, D, D), wd), ((1, 1, D), f32),
              ((1, 1, D), f32), ((1, 1, D), f32),
              ((1, D, F), wd), ((1, 1, F), f32),
              ((1, F, D), wd), ((1, 1, D), f32),
              ((1, 1, D), f32), ((1, 1, D), f32),
              ((D, N), wd), ((1, N), f32),
              ((Bt, S, N), patches.dtype)]
    vmem_est = 2 * sum(_block_bytes(s, d) for s, d in blocks)
    vmem_est += _block_bytes((Bt, S, D), f32)                    # activation scratch
    vmem_limit = int(min(max(vmem_est + (8 << 20), 32 << 20), 64 << 20))

    kernel = functools.partial(
        _fused_kernel, nhead=nhead, eps=eps, embed_scale=math.sqrt(D),
        compute_dtype=wd, approx_recip=(wd != jnp.dtype(jnp.float32)))

    return pl.pallas_call(
        kernel,
        out_shape=jax.ShapeDtypeStruct((B, S, N), patches.dtype),
        grid=(B // Bt, L),
        in_specs=in_specs,
        out_specs=pl.BlockSpec((Bt, S, N), lambda i, l: (i, 0, 0)),
        scratch_shapes=[pltpu.VMEM((Bt, S, D), jnp.float32)],
        compiler_params=pltpu.CompilerParams(
            dimension_semantics=("parallel", "arbitrary"),
            vmem_limit_bytes=vmem_limit),
    )(patches, w_enc, params["b_enc"], params["pe"],
      w_qkv, b_qkv, w_o, layers["b_o"], layers["ln1_g"], layers["ln1_b"],
      w_ff1, layers["b_ff1"], w_ff2, layers["b_ff2"],
      layers["ln2_g"], layers["ln2_b"],
      w_dec, params["b_dec"])


# ------------------------------ model forward ------------------------------

def spatial_transformer_encoder(x, params, *, d_model, nhead,
                                weights_dtype=jnp.bfloat16, batch_block=None):
    B, C, H, W = x.shape
    h, w = H // 4, W // 4
    S = h * w

    # encoder input patchify: 4x4/stride-4 patches, flatten order (C, 4, 4).
    # TODO(synk): fold this relayout into the kernel index_map if profiling shows it matters.
    patches = x.reshape(B, C, h, 4, w, 4).transpose(0, 2, 4, 1, 3, 5).reshape(B, S, C * 16)

    dec = fused_forward(patches, params, nhead=nhead,
                        weights_dtype=weights_dtype, batch_block=batch_block)

    # decoder un-patchify: 4x4/stride-4 transposed conv output scatter.
    out = dec.reshape(B, h, w, C, 4, 4).transpose(0, 3, 1, 4, 2, 5)
    return out.reshape(B, C, H, W)


# --------------------------- deterministic init ----------------------------

def init_params(key, *, in_channels, d_model, input_shape, nhead,
                dim_feedforward, num_layers):
    H, W = input_shape
    S = (H // 4) * (W // 4)

    def dense(k, shape):
        return jax.random.normal(k, shape, jnp.float32) * 0.02

    k_enc, k_dec, k_layers = jax.random.split(key, 3)

    # sinusoidal positional encoding (matches the PositionalEncoding buffer)
    position = jnp.arange(S, dtype=jnp.float32)[:, None]
    div_term = jnp.exp(jnp.arange(0, d_model, 2, dtype=jnp.float32) *
                       (-math.log(10000.0) / d_model))
    pe = jnp.zeros((S, d_model), jnp.float32)
    pe = pe.at[:, 0::2].set(jnp.sin(position * div_term))
    pe = pe.at[:, 1::2].set(jnp.cos(position * div_term))

    per_layer = []
    for lk in jax.random.split(k_layers, num_layers):
        ks = jax.random.split(lk, 4)
        per_layer.append(dict(
            # w_qkv = in_proj_weight.T, [q|k|v] column blocks, head-contiguous.
            w_qkv=dense(ks[0], (d_model, 3 * d_model)),
            b_qkv=jnp.zeros((1, 3 * d_model), jnp.float32),
            w_o=dense(ks[1], (d_model, d_model)),        # out_proj.weight.T
            b_o=jnp.zeros((1, d_model), jnp.float32),
            ln1_g=jnp.ones((1, d_model), jnp.float32),
            ln1_b=jnp.zeros((1, d_model), jnp.float32),
            w_ff1=dense(ks[2], (d_model, dim_feedforward)),
            b_ff1=jnp.zeros((1, dim_feedforward), jnp.float32),
            w_ff2=dense(ks[3], (dim_feedforward, d_model)),
            b_ff2=jnp.zeros((1, d_model), jnp.float32),
            ln2_g=jnp.ones((1, d_model), jnp.float32),
            ln2_b=jnp.zeros((1, d_model), jnp.float32),
        ))
    # stack per-layer params with a leading layer axis (grid-indexed by the layer axis)
    layers = {k: jnp.stack([d[k] for d in per_layer]) for k in per_layer[0]}

    return dict(
        pe=pe,
        # TODO(synk): swap in the real `modules.<encoder/decoder>` weights if available.
        w_enc=dense(k_enc, (in_channels * 16, d_model)),
        b_enc=jnp.zeros((1, d_model), jnp.float32),
        w_dec=dense(k_dec, (d_model, in_channels * 16)),
        b_dec=jnp.zeros((1, in_channels * 16), jnp.float32),
        layers=layers,
    )


if __name__ == "__main__":
    B, C = 2, 4
    input_shape = (16, 16)
    d_model, nhead, dim_feedforward, num_layers = 32, 4, 64, 2

    key = jax.random.PRNGKey(0)
    k_x, k_p = jax.random.split(key)
    x = jax.random.normal(k_x, (B, C, *input_shape), jnp.float32)
    params = init_params(k_p, in_channels=C, d_model=d_model,
                         input_shape=input_shape, nhead=nhead,
                         dim_feedforward=dim_feedforward,
                         num_layers=num_layers)

    fwd = jax.jit(functools.partial(spatial_transformer_encoder,
                                    d_model=d_model, nhead=nhead,
                                    weights_dtype=jnp.bfloat16))
    out = fwd(x, params)
    jax.block_until_ready(out)
    assert out.shape == (B, C, *input_shape), out.shape
    print("KERNEL_OK")
</pallas_src>

<mosaic_0001>
module attributes {stable_mosaic.version = 11 : i64} {
  func.func @_fused_kernel(%arg0: i32, %arg1: i32, %arg2: memref<1x16x64xf32, #tpu.memory_space<vmem>>, %arg3: memref<64x32xbf16, #tpu.memory_space<vmem>>, %arg4: memref<1x32xf32, #tpu.memory_space<vmem>>, %arg5: memref<16x32xf32, #tpu.memory_space<vmem>>, %arg6: memref<1x32x96xbf16, #tpu.memory_space<vmem>>, %arg7: memref<1x1x96xf32, #tpu.memory_space<vmem>>, %arg8: memref<1x32x32xbf16, #tpu.memory_space<vmem>>, %arg9: memref<1x1x32xf32, #tpu.memory_space<vmem>>, %arg10: memref<1x1x32xf32, #tpu.memory_space<vmem>>, %arg11: memref<1x1x32xf32, #tpu.memory_space<vmem>>, %arg12: memref<1x32x64xbf16, #tpu.memory_space<vmem>>, %arg13: memref<1x1x64xf32, #tpu.memory_space<vmem>>, %arg14: memref<1x64x32xbf16, #tpu.memory_space<vmem>>, %arg15: memref<1x1x32xf32, #tpu.memory_space<vmem>>, %arg16: memref<1x1x32xf32, #tpu.memory_space<vmem>>, %arg17: memref<1x1x32xf32, #tpu.memory_space<vmem>>, %arg18: memref<32x64xbf16, #tpu.memory_space<vmem>>, %arg19: memref<1x64xf32, #tpu.memory_space<vmem>>, %arg20: memref<1x16x64xf32, #tpu.memory_space<vmem>>, %arg21: memref<1x16x32xf32, #tpu.memory_space<vmem>>) attributes {dimension_semantics = [#tpu.dimension_semantics<parallel>, #tpu.dimension_semantics<arbitrary>], iteration_bounds = array<i64: 2, 2>, scalar_prefetch = 0 : i64, scratch_operands = 1 : i64, tpu.core_type = #tpu.core_type<tc>, window_params = [{transform_indices = @transform_0, window_bounds = array<i64: 1, 16, 64>}, {pipeline_mode = #tpu.pipeline_mode<synchronous>, transform_indices = @transform_1, window_bounds = array<i64: 64, 32>}, {pipeline_mode = #tpu.pipeline_mode<synchronous>, transform_indices = @transform_2, window_bounds = array<i64: 1, 32>}, {pipeline_mode = #tpu.pipeline_mode<synchronous>, transform_indices = @transform_3, window_bounds = array<i64: 16, 32>}, {transform_indices = @transform_4, window_bounds = array<i64: 1, 32, 96>}, {transform_indices = @transform_5, window_bounds = array<i64: 1, 1, 96>}, {transform_indices = @transform_6, window_bounds = array<i64: 1, 32, 32>}, {transform_indices = @transform_7, window_bounds = array<i64: 1, 1, 32>}, {transform_indices = @transform_8, window_bounds = array<i64: 1, 1, 32>}, {transform_indices = @transform_9, window_bounds = array<i64: 1, 1, 32>}, {transform_indices = @transform_10, window_bounds = array<i64: 1, 32, 64>}, {transform_indices = @transform_11, window_bounds = array<i64: 1, 1, 64>}, {transform_indices = @transform_12, window_bounds = array<i64: 1, 64, 32>}, {transform_indices = @transform_13, window_bounds = array<i64: 1, 1, 32>}, {transform_indices = @transform_14, window_bounds = array<i64: 1, 1, 32>}, {transform_indices = @transform_15, window_bounds = array<i64: 1, 1, 32>}, {pipeline_mode = #tpu.pipeline_mode<synchronous>, transform_indices = @transform_16, window_bounds = array<i64: 32, 64>}, {pipeline_mode = #tpu.pipeline_mode<synchronous>, transform_indices = @transform_17, window_bounds = array<i64: 1, 64>}, {transform_indices = @transform_18, window_bounds = array<i64: 1, 16, 64>}]} {
    %c0_i32 = arith.constant 0 : i32
    %0 = arith.cmpi eq, %arg1, %c0_i32 : i32
    %1 = arith.extui %0 : i1 to i32
    %c0_i32_0 = arith.constant 0 : i32
    %2 = arith.cmpi ne, %1, %c0_i32_0 : i32
    scf.if %2 {
      %c0_72 = arith.constant 0 : index
      %c0_73 = arith.constant 0 : index
      %c0_74 = arith.constant 0 : index
      %178 = vector.load %arg2[%c0_72, %c0_73, %c0_74] : memref<1x16x64xf32, #tpu.memory_space<vmem>>, vector<1x16x64xf32>
      %179 = vector.shape_cast %178 : vector<1x16x64xf32> to vector<16x64xf32>
      %c0_75 = arith.constant 0 : index
      %c0_76 = arith.constant 0 : index
      %180 = vector.load %arg3[%c0_75, %c0_76] : memref<64x32xbf16, #tpu.memory_space<vmem>>, vector<64x32xbf16>
      %181 = arith.truncf %179 : vector<16x64xf32> to vector<16x64xbf16>
      %cst_77 = arith.constant dense<0.000000e+00> : vector<16x32xf32>
      %182 = tpu.matmul %181, %180, %cst_77 {dimension_numbers = #tpu.dot_dimension_numbers<[1], [0], [0], [1], [0, 0, 1, 1], [], []>} : vector<16x64xbf16>, vector<64x32xbf16>, vector<16x32xf32> -> vector<16x32xf32>
      %c0_78 = arith.constant 0 : index
      %c0_79 = arith.constant 0 : index
      %183 = vector.load %arg4[%c0_78, %c0_79] : memref<1x32xf32, #tpu.memory_space<vmem>>, vector<1x32xf32>
      %184 = vector.broadcast %183 : vector<1x32xf32> to vector<16x32xf32>
      %185 = arith.addf %182, %184 : vector<16x32xf32>
      %cst_80 = arith.constant 0.000000e+00 : f32
      %186 = vector.broadcast %cst_80 : f32 to vector<16x32xf32>
      %187 = arith.maximumf %185, %186 : vector<16x32xf32>
      %cst_81 = arith.constant 5.65685415 : f32
      %188 = vector.broadcast %cst_81 : f32 to vector<16x32xf32>
      %189 = arith.mulf %187, %188 : vector<16x32xf32>
      %190 = vector.shape_cast %189 : vector<16x32xf32> to vector<1x16x32xf32>
      %c0_82 = arith.constant 0 : index
      %c0_83 = arith.constant 0 : index
      %191 = vector.load %arg5[%c0_82, %c0_83] : memref<16x32xf32, #tpu.memory_space<vmem>>, vector<16x32xf32>
      %192 = vector.shape_cast %191 : vector<16x32xf32> to vector<1x16x32xf32>
      %193 = arith.addf %190, %192 : vector<1x16x32xf32>
      %c0_84 = arith.constant 0 : index
      %c0_85 = arith.constant 0 : index
      %c0_86 = arith.constant 0 : index
      %194 = vector.load %arg21[%c0_84, %c0_85, %c0_86] : memref<1x16x32xf32, #tpu.memory_space<vmem>>, vector<1x16x32xf32>
      tpu.vector_store %arg21[%c0_84, %c0_85, %c0_86], %193 {strides = array<i32>} : memref<1x16x32xf32, #tpu.memory_space<vmem>>, vector<1x16x32xf32>,
    } else {
    }
    %c0 = arith.constant 0 : index
    %c0_1 = arith.constant 0 : index
    %c0_2 = arith.constant 0 : index
    %3 = vector.load %arg21[%c0, %c0_1, %c0_2] : memref<1x16x32xf32, #tpu.memory_space<vmem>>, vector<1x16x32xf32>
    %4 = vector.shape_cast %3 : vector<1x16x32xf32> to vector<16x32xf32>
    %c0_3 = arith.constant 0 : index
    %c0_4 = arith.constant 0 : index
    %c0_5 = arith.constant 0 : index
    %5 = vector.load %arg6[%c0_3, %c0_4, %c0_5] : memref<1x32x96xbf16, #tpu.memory_space<vmem>>, vector<1x32x96xbf16>
    %6 = vector.shape_cast %5 : vector<1x32x96xbf16> to vector<32x96xbf16>
    %7 = arith.truncf %4 : vector<16x32xf32> to vector<16x32xbf16>
    %cst = arith.constant dense<0.000000e+00> : vector<16x96xf32>
    %8 = tpu.matmul %7, %6, %cst {dimension_numbers = #tpu.dot_dimension_numbers<[1], [0], [0], [1], [0, 0, 1, 1], [], []>} : vector<16x32xbf16>, vector<32x96xbf16>, vector<16x96xf32> -> vector<16x96xf32>
    %c0_6 = arith.constant 0 : index
    %c0_7 = arith.constant 0 : index
    %c0_8 = arith.constant 0 : index
    %9 = vector.load %arg7[%c0_6, %c0_7, %c0_8] : memref<1x1x96xf32, #tpu.memory_space<vmem>>, vector<1x1x96xf32>
    %10 = vector.shape_cast %9 : vector<1x1x96xf32> to vector<1x96xf32>
    %11 = vector.broadcast %10 : vector<1x96xf32> to vector<16x96xf32>
    %12 = arith.addf %8, %11 : vector<16x96xf32>
    %13 = vector.shape_cast %12 : vector<16x96xf32> to vector<1x16x96xf32>
    %14 = vector.extract_strided_slice %13 {offsets = [0, 0, 0], sizes = [1, 16, 8], strides = [1, 1, 1]} : vector<1x16x96xf32> to vector<1x16x8xf32>
    %15 = arith.truncf %14 : vector<1x16x8xf32> to vector<1x16x8xbf16>
    %16 = vector.extract_strided_slice %13 {offsets = [0, 0, 32], sizes = [1, 16, 8], strides = [1, 1, 1]} : vector<1x16x96xf32> to vector<1x16x8xf32>
    %17 = arith.truncf %16 : vector<1x16x8xf32> to vector<1x16x8xbf16>
    %18 = vector.extract_strided_slice %13 {offsets = [0, 0, 64], sizes = [1, 16, 8], strides = [1, 1, 1]} : vector<1x16x96xf32> to vector<1x16x8xf32>
    %19 = arith.truncf %18 : vector<1x16x8xf32> to vector<1x16x8xbf16>
    "tpu.trace_start"() <{level = 10 : i32, message = "bqd,bkd->bqk"}> : () -> ()
    %cst_9 = arith.constant dense<0.000000e+00> : vector<1x16x16xf32>
    %20 = tpu.matmul %15, %17, %cst_9 {dimension_numbers = #tpu.dot_dimension_numbers<[2], [2], [1], [1], [0, 0, 0, 1, 1, 1], [0], [0]>} : vector<1x16x8xbf16>, vector<1x16x8xbf16>, vector<1x16x16xf32> -> vector<1x16x16xf32>
    "tpu.trace_stop"() : () -> ()
    %cst_10 = arith.constant dense<0xFF800000> : vector<1x16xf32>
    %21 = vector.multi_reduction <maximumf>, %20, %cst_10 [2] : vector<1x16x16xf32> to vector<1x16xf32>
    %22 = vector.shape_cast %21 : vector<1x16xf32> to vector<1x16x1xf32>
    %23 = vector.broadcast %22 : vector<1x16x1xf32> to vector<1x16x16xf32>
    %24 = arith.subf %20, %23 : vector<1x16x16xf32>
    %25 = math.exp %24 : vector<1x16x16xf32>
    %cst_11 = arith.constant dense<0.000000e+00> : vector<1x16xf32>
    %26 = vector.multi_reduction <add>, %25, %cst_11 [2] : vector<1x16x16xf32> to vector<1x16xf32>
    %27 = vector.shape_cast %26 : vector<1x16xf32> to vector<1x16x1xf32>
    %28 = tpu.reciprocal %27 {approx = true} : vector<1x16x1xf32> -> vector<1x16x1xf32>
    %29 = vector.broadcast %28 : vector<1x16x1xf32> to vector<1x16x16xf32>
    %30 = arith.mulf %25, %29 : vector<1x16x16xf32>
    %31 = arith.truncf %30 : vector<1x16x16xf32> to vector<1x16x16xbf16>
    "tpu.trace_start"() <{level = 10 : i32, message = "bqk,bkd->bqd"}> : () -> ()
    %cst_12 = arith.constant dense<0.000000e+00> : vector<1x16x8xf32>
    %32 = tpu.matmul %31, %19, %cst_12 {dimension_numbers = #tpu.dot_dimension_numbers<[2], [1], [1], [2], [0, 0, 0, 1, 1, 2], [0], [0]>} : vector<1x16x16xbf16>, vector<1x16x8xbf16>, vector<1x16x8xf32> -> vector<1x16x8xf32>
    "tpu.trace_stop"() : () -> ()
    %33 = vector.extract_strided_slice %13 {offsets = [0, 0, 8], sizes = [1, 16, 8], strides = [1, 1, 1]} : vector<1x16x96xf32> to vector<1x16x8xf32>
    %34 = arith.truncf %33 : vector<1x16x8xf32> to vector<1x16x8xbf16>
    %35 = vector.extract_strided_slice %13 {offsets = [0, 0, 40], sizes = [1, 16, 8], strides = [1, 1, 1]} : vector<1x16x96xf32> to vector<1x16x8xf32>
    %36 = arith.truncf %35 : vector<1x16x8xf32> to vector<1x16x8xbf16>
    %37 = vector.extract_strided_slice %13 {offsets = [0, 0, 72], sizes = [1, 16, 8], strides = [1, 1, 1]} : vector<1x16x96xf32> to vector<1x16x8xf32>
    %38 = arith.truncf %37 : vector<1x16x8xf32> to vector<1x16x8xbf16>
    "tpu.trace_start"() <{level = 10 : i32, message = "bqd,bkd->bqk"}> : () -> ()
    %cst_13 = arith.constant dense<0.000000e+00> : vector<1x16x16xf32>
    %39 = tpu.matmul %34, %36, %cst_13 {dimension_numbers = #tpu.dot_dimension_numbers<[2], [2], [1], [1], [0, 0, 0, 1, 1, 1], [0], [0]>} : vector<1x16x8xbf16>, vector<1x16x8xbf16>, vector<1x16x16xf32> -> vector<1x16x16xf32>
    "tpu.trace_stop"() : () -> ()
    %cst_14 = arith.constant dense<0xFF800000> : vector<1x16xf32>
    %40 = vector.multi_reduction <maximumf>, %39, %cst_14 [2] : vector<1x16x16xf32> to vector<1x16xf32>
    %41 = vector.shape_cast %40 : vector<1x16xf32> to vector<1x16x1xf32>
    %42 = vector.broadcast %41 : vector<1x16x1xf32> to vector<1x16x16xf32>
    %43 = arith.subf %39, %42 : vector<1x16x16xf32>
    %44 = math.exp %43 : vector<1x16x16xf32>
    %cst_15 = arith.constant dense<0.000000e+00> : vector<1x16xf32>
    %45 = vector.multi_reduction <add>, %44, %cst_15 [2] : vector<1x16x16xf32> to vector<1x16xf32>
    %46 = vector.shape_cast %45 : vector<1x16xf32> to vector<1x16x1xf32>
    %47 = tpu.reciprocal %46 {approx = true} : vector<1x16x1xf32> -> vector<1x16x1xf32>
    %48 = vector.broadcast %47 : vector<1x16x1xf32> to vector<1x16x16xf32>
    %49 = arith.mulf %44, %48 : vector<1x16x16xf32>
    %50 = arith.truncf %49 : vector<1x16x16xf32> to vector<1x16x16xbf16>
    "tpu.trace_start"() <{level = 10 : i32, message = "bqk,bkd->bqd"}> : () -> ()
    %cst_16 = arith.constant dense<0.000000e+00> : vector<1x16x8xf32>
    %51 = tpu.matmul %50, %38, %cst_16 {dimension_numbers = #tpu.dot_dimension_numbers<[2], [1], [1], [2], [0, 0, 0, 1, 1, 2], [0], [0]>} : vector<1x16x16xbf16>, vector<1x16x8xbf16>, vector<1x16x8xf32> -> vector<1x16x8xf32>
    "tpu.trace_stop"() : () -> ()
    %52 = vector.extract_strided_slice %13 {offsets = [0, 0, 16], sizes = [1, 16, 8], strides = [1, 1, 1]} : vector<1x16x96xf32> to vector<1x16x8xf32>
    %53 = arith.truncf %52 : vector<1x16x8xf32> to vector<1x16x8xbf16>
    %54 = vector.extract_strided_slice %13 {offsets = [0, 0, 48], sizes = [1, 16, 8], strides = [1, 1, 1]} : vector<1x16x96xf32> to vector<1x16x8xf32>
    %55 = arith.truncf %54 : vector<1x16x8xf32> to vector<1x16x8xbf16>
    %56 = vector.extract_strided_slice %13 {offsets = [0, 0, 80], sizes = [1, 16, 8], strides = [1, 1, 1]} : vector<1x16x96xf32> to vector<1x16x8xf32>
    %57 = arith.truncf %56 : vector<1x16x8xf32> to vector<1x16x8xbf16>
    "tpu.trace_start"() <{level = 10 : i32, message = "bqd,bkd->bqk"}> : () -> ()
    %cst_17 = arith.constant dense<0.000000e+00> : vector<1x16x16xf32>
    %58 = tpu.matmul %53, %55, %cst_17 {dimension_numbers = #tpu.dot_dimension_numbers<[2], [2], [1], [1], [0, 0, 0, 1, 1, 1], [0], [0]>} : vector<1x16x8xbf16>, vector<1x16x8xbf16>, vector<1x16x16xf32> -> vector<1x16x16xf32>
    "tpu.trace_stop"() : () -> ()
    %cst_18 = arith.constant dense<0xFF800000> : vector<1x16xf32>
    %59 = vector.multi_reduction <maximumf>, %58, %cst_18 [2] : vector<1x16x16xf32> to vector<1x16xf32>
    %60 = vector.shape_cast %59 : vector<1x16xf32> to vector<1x16x1xf32>
    %61 = vector.broadcast %60 : vector<1x16x1xf32> to vector<1x16x16xf32>
    %62 = arith.subf %58, %61 : vector<1x16x16xf32>
    %63 = math.exp %62 : vector<1x16x16xf32>
    %cst_19 = arith.constant dense<0.000000e+00> : vector<1x16xf32>
    %64 = vector.multi_reduction <add>, %63, %cst_19 [2] : vector<1x16x16xf32> to vector<1x16xf32>
    %65 = vector.shape_cast %64 : vector<1x16xf32> to vector<1x16x1xf32>
    %66 = tpu.reciprocal %65 {approx = true} : vector<1x16x1xf32> -> vector<1x16x1xf32>
    %67 = vector.broadcast %66 : vector<1x16x1xf32> to vector<1x16x16xf32>
    %68 = arith.mulf %63, %67 : vector<1x16x16xf32>
    %69 = arith.truncf %68 : vector<1x16x16xf32> to vector<1x16x16xbf16>
    "tpu.trace_start"() <{level = 10 : i32, message = "bqk,bkd->bqd"}> : () -> ()
    %cst_20 = arith.constant dense<0.000000e+00> : vector<1x16x8xf32>
    %70 = tpu.matmul %69, %57, %cst_20 {dimension_numbers = #tpu.dot_dimension_numbers<[2], [1], [1], [2], [0, 0, 0, 1, 1, 2], [0], [0]>} : vector<1x16x16xbf16>, vector<1x16x8xbf16>, vector<1x16x8xf32> -> vector<1x16x8xf32>
    "tpu.trace_stop"() : () -> ()
    %71 = vector.extract_strided_slice %13 {offsets = [0, 0, 24], sizes = [1, 16, 8], strides = [1, 1, 1]} : vector<1x16x96xf32> to vector<1x16x8xf32>
    %72 = arith.truncf %71 : vector<1x16x8xf32> to vector<1x16x8xbf16>
    %73 = vector.extract_strided_slice %13 {offsets = [0, 0, 56], sizes = [1, 16, 8], strides = [1, 1, 1]} : vector<1x16x96xf32> to vector<1x16x8xf32>
    %74 = arith.truncf %73 : vector<1x16x8xf32> to vector<1x16x8xbf16>
    %75 = vector.extract_strided_slice %13 {offsets = [0, 0, 88], sizes = [1, 16, 8], strides = [1, 1, 1]} : vector<1x16x96xf32> to vector<1x16x8xf32>
    %76 = arith.truncf %75 : vector<1x16x8xf32> to vector<1x16x8xbf16>
    "tpu.trace_start"() <{level = 10 : i32, message = "bqd,bkd->bqk"}> : () -> ()
    %cst_21 = arith.constant dense<0.000000e+00> : vector<1x16x16xf32>
    %77 = tpu.matmul %72, %74, %cst_21 {dimension_numbers = #tpu.dot_dimension_numbers<[2], [2], [1], [1], [0, 0, 0, 1, 1, 1], [0], [0]>} : vector<1x16x8xbf16>, vector<1x16x8xbf16>, vector<1x16x16xf32> -> vector<1x16x16xf32>
    "tpu.trace_stop"() : () -> ()
    %cst_22 = arith.constant dense<0xFF800000> : vector<1x16xf32>
    %78 = vector.multi_reduction <maximumf>, %77, %cst_22 [2] : vector<1x16x16xf32> to vector<1x16xf32>
    %79 = vector.shape_cast %78 : vector<1x16xf32> to vector<1x16x1xf32>
    %80 = vector.broadcast %79 : vector<1x16x1xf32> to vector<1x16x16xf32>
    %81 = arith.subf %77, %80 : vector<1x16x16xf32>
    %82 = math.exp %81 : vector<1x16x16xf32>
    %cst_23 = arith.constant dense<0.000000e+00> : vector<1x16xf32>
    %83 = vector.multi_reduction <add>, %82, %cst_23 [2] : vector<1x16x16xf32> to vector<1x16xf32>
    %84 = vector.shape_cast %83 : vector<1x16xf32> to vector<1x16x1xf32>
    %85 = tpu.reciprocal %84 {approx = true} : vector<1x16x1xf32> -> vector<1x16x1xf32>
    %86 = vector.broadcast %85 : vector<1x16x1xf32> to vector<1x16x16xf32>
    %87 = arith.mulf %82, %86 : vector<1x16x16xf32>
    %88 = arith.truncf %87 : vector<1x16x16xf32> to vector<1x16x16xbf16>
    "tpu.trace_start"() <{level = 10 : i32, message = "bqk,bkd->bqd"}> : () -> ()
    %cst_24 = arith.constant dense<0.000000e+00> : vector<1x16x8xf32>
    %89 = tpu.matmul %88, %76, %cst_24 {dimension_numbers = #tpu.dot_dimension_numbers<[2], [1], [1], [2], [0, 0, 0, 1, 1, 2], [0], [0]>} : vector<1x16x16xbf16>, vector<1x16x8xbf16>, vector<1x16x8xf32> -> vector<1x16x8xf32>
    "tpu.trace_stop"() : () -> ()
    %90 = tpu.concatenate %32, %51, %70, %89 in 2 : vector<1x16x8xf32>, vector<1x16x8xf32>, vector<1x16x8xf32>, vector<1x16x8xf32> -> vector<1x16x32xf32>
    %91 = vector.shape_cast %90 : vector<1x16x32xf32> to vector<16x32xf32>
    %c0_25 = arith.constant 0 : index
    %c0_26 = arith.constant 0 : index
    %c0_27 = arith.constant 0 : index
    %92 = vector.load %arg8[%c0_25, %c0_26, %c0_27] : memref<1x32x32xbf16, #tpu.memory_space<vmem>>, vector<1x32x32xbf16>
    %93 = vector.shape_cast %92 : vector<1x32x32xbf16> to vector<32x32xbf16>
    %94 = arith.truncf %91 : vector<16x32xf32> to vector<16x32xbf16>
    %cst_28 = arith.constant dense<0.000000e+00> : vector<16x32xf32>
    %95 = tpu.matmul %94, %93, %cst_28 {dimension_numbers = #tpu.dot_dimension_numbers<[1], [0], [0], [1], [0, 0, 1, 1], [], []>} : vector<16x32xbf16>, vector<32x32xbf16>, vector<16x32xf32> -> vector<16x32xf32>
    %c0_29 = arith.constant 0 : index
    %c0_30 = arith.constant 0 : index
    %c0_31 = arith.constant 0 : index
    %96 = vector.load %arg9[%c0_29, %c0_30, %c0_31] : memref<1x1x32xf32, #tpu.memory_space<vmem>>, vector<1x1x32xf32>
    %97 = vector.shape_cast %96 : vector<1x1x32xf32> to vector<1x32xf32>
    %98 = vector.broadcast %97 : vector<1x32xf32> to vector<16x32xf32>
    %99 = arith.addf %95, %98 : vector<16x32xf32>
    %100 = arith.addf %4, %99 : vector<16x32xf32>
    %c0_32 = arith.constant 0 : index
    %c0_33 = arith.constant 0 : index
    %c0_34 = arith.constant 0 : index
    %101 = vector.load %arg10[%c0_32, %c0_33, %c0_34] : memref<1x1x32xf32, #tpu.memory_space<vmem>>, vector<1x1x32xf32>
    %102 = vector.shape_cast %101 : vector<1x1x32xf32> to vector<1x32xf32>
    %c0_35 = arith.constant 0 : index
    %c0_36 = arith.constant 0 : index
    %c0_37 = arith.constant 0 : index
    %103 = vector.load %arg11[%c0_35, %c0_36, %c0_37] : memref<1x1x32xf32, #tpu.memory_space<vmem>>, vector<1x1x32xf32>
    %104 = vector.shape_cast %103 : vector<1x1x32xf32> to vector<1x32xf32>
    %cst_38 = arith.constant dense<0.000000e+00> : vector<16xf32>
    %105 = vector.multi_reduction <add>, %100, %cst_38 [1] : vector<16x32xf32> to vector<16xf32>
    %106 = vector.shape_cast %105 : vector<16xf32> to vector<16x1xf32>
    %cst_39 = arith.constant 3.200000e+01 : f32
    %107 = vector.broadcast %cst_39 : f32 to vector<16x1xf32>
    %108 = arith.divf %106, %107 : vector<16x1xf32>
    %109 = vector.broadcast %108 : vector<16x1xf32> to vector<16x32xf32>
    %110 = arith.subf %100, %109 : vector<16x32xf32>
    %111 = arith.mulf %110, %110 : vector<16x32xf32>
    %cst_40 = arith.constant dense<0.000000e+00> : vector<16xf32>
    %112 = vector.multi_reduction <add>, %111, %cst_40 [1] : vector<16x32xf32> to vector<16xf32>
    %113 = vector.shape_cast %112 : vector<16xf32> to vector<16x1xf32>
    %cst_41 = arith.constant 3.200000e+01 : f32
    %114 = vector.broadcast %cst_41 : f32 to vector<16x1xf32>
    %115 = arith.divf %113, %114 : vector<16x1xf32>
    %116 = vector.broadcast %108 : vector<16x1xf32> to vector<16x32xf32>
    %117 = arith.subf %100, %116 : vector<16x32xf32>
    %cst_42 = arith.constant 9.99999974E-6 : f32
    %118 = vector.broadcast %cst_42 : f32 to vector<16x1xf32>
    %119 = arith.addf %115, %118 : vector<16x1xf32>
    %120 = math.rsqrt %119 : vector<16x1xf32>
    %121 = vector.broadcast %120 : vector<16x1xf32> to vector<16x32xf32>
    %122 = arith.mulf %117, %121 : vector<16x32xf32>
    %123 = vector.broadcast %102 : vector<1x32xf32> to vector<16x32xf32>
    %124 = arith.mulf %122, %123 : vector<16x32xf32>
    %125 = vector.broadcast %104 : vector<1x32xf32> to vector<16x32xf32>
    %126 = arith.addf %124, %125 : vector<16x32xf32>
    %c0_43 = arith.constant 0 : index
    %c0_44 = arith.constant 0 : index
    %c0_45 = arith.constant 0 : index
    %127 = vector.load %arg12[%c0_43, %c0_44, %c0_45] : memref<1x32x64xbf16, #tpu.memory_space<vmem>>, vector<1x32x64xbf16>
    %128 = vector.shape_cast %127 : vector<1x32x64xbf16> to vector<32x64xbf16>
    %129 = arith.truncf %126 : vector<16x32xf32> to vector<16x32xbf16>
    %cst_46 = arith.constant dense<0.000000e+00> : vector<16x64xf32>
    %130 = tpu.matmul %129, %128, %cst_46 {dimension_numbers = #tpu.dot_dimension_numbers<[1], [0], [0], [1], [0, 0, 1, 1], [], []>} : vector<16x32xbf16>, vector<32x64xbf16>, vector<16x64xf32> -> vector<16x64xf32>
    %c0_47 = arith.constant 0 : index
    %c0_48 = arith.constant 0 : index
    %c0_49 = arith.constant 0 : index
    %131 = vector.load %arg13[%c0_47, %c0_48, %c0_49] : memref<1x1x64xf32, #tpu.memory_space<vmem>>, vector<1x1x64xf32>
    %132 = vector.shape_cast %131 : vector<1x1x64xf32> to vector<1x64xf32>
    %133 = vector.broadcast %132 : vector<1x64xf32> to vector<16x64xf32>
    %134 = arith.addf %130, %133 : vector<16x64xf32>
    %cst_50 = arith.constant 0.000000e+00 : f32
    %135 = vector.broadcast %cst_50 : f32 to vector<16x64xf32>
    %136 = arith.maximumf %134, %135 : vector<16x64xf32>
    %c0_51 = arith.constant 0 : index
    %c0_52 = arith.constant 0 : index
    %c0_53 = arith.constant 0 : index
    %137 = vector.load %arg14[%c0_51, %c0_52, %c0_53] : memref<1x64x32xbf16, #tpu.memory_space<vmem>>, vector<1x64x32xbf16>
    %138 = vector.shape_cast %137 : vector<1x64x32xbf16> to vector<64x32xbf16>
    %139 = arith.truncf %136 : vector<16x64xf32> to vector<16x64xbf16>
    %cst_54 = arith.constant dense<0.000000e+00> : vector<16x32xf32>
    %140 = tpu.matmul %139, %138, %cst_54 {dimension_numbers = #tpu.dot_dimension_numbers<[1], [0], [0], [1], [0, 0, 1, 1], [], []>} : vector<16x64xbf16>, vector<64x32xbf16>, vector<16x32xf32> -> vector<16x32xf32>
    %c0_55 = arith.constant 0 : index
    %c0_56 = arith.constant 0 : index
    %c0_57 = arith.constant 0 : index
    %141 = vector.load %arg15[%c0_55, %c0_56, %c0_57] : memref<1x1x32xf32, #tpu.memory_space<vmem>>, vector<1x1x32xf32>
    %142 = vector.shape_cast %141 : vector<1x1x32xf32> to vector<1x32xf32>
    %143 = vector.broadcast %142 : vector<1x32xf32> to vector<16x32xf32>
    %144 = arith.addf %140, %143 : vector<16x32xf32>
    %145 = arith.addf %126, %144 : vector<16x32xf32>
    %c0_58 = arith.constant 0 : index
    %c0_59 = arith.constant 0 : index
    %c0_60 = arith.constant 0 : index
    %146 = vector.load %arg16[%c0_58, %c0_59, %c0_60] : memref<1x1x32xf32, #tpu.memory_space<vmem>>, vector<1x1x32xf32>
    %147 = vector.shape_cast %146 : vector<1x1x32xf32> to vector<1x32xf32>
    %c0_61 = arith.constant 0 : index
    %c0_62 = arith.constant 0 : index
    %c0_63 = arith.constant 0 : index
    %148 = vector.load %arg17[%c0_61, %c0_62, %c0_63] : memref<1x1x32xf32, #tpu.memory_space<vmem>>, vector<1x1x32xf32>
    %149 = vector.shape_cast %148 : vector<1x1x32xf32> to vector<1x32xf32>
    %cst_64 = arith.constant dense<0.000000e+00> : vector<16xf32>
    %150 = vector.multi_reduction <add>, %145, %cst_64 [1] : vector<16x32xf32> to vector<16xf32>
    %151 = vector.shape_cast %150 : vector<16xf32> to vector<16x1xf32>
    %cst_65 = arith.constant 3.200000e+01 : f32
    %152 = vector.broadcast %cst_65 : f32 to vector<16x1xf32>
    %153 = arith.divf %151, %152 : vector<16x1xf32>
    %154 = vector.broadcast %153 : vector<16x1xf32> to vector<16x32xf32>
    %155 = arith.subf %145, %154 : vector<16x32xf32>
    %156 = arith.mulf %155, %155 : vector<16x32xf32>
    %cst_66 = arith.constant dense<0.000000e+00> : vector<16xf32>
    %157 = vector.multi_reduction <add>, %156, %cst_66 [1] : vector<16x32xf32> to vector<16xf32>
    %158 = vector.shape_cast %157 : vector<16xf32> to vector<16x1xf32>
    %cst_67 = arith.constant 3.200000e+01 : f32
    %159 = vector.broadcast %cst_67 : f32 to vector<16x1xf32>
    %160 = arith.divf %158, %159 : vector<16x1xf32>
    %161 = vector.broadcast %153 : vector<16x1xf32> to vector<16x32xf32>
    %162 = arith.subf %145, %161 : vector<16x32xf32>
    %cst_68 = arith.constant 9.99999974E-6 : f32
    %163 = vector.broadcast %cst_68 : f32 to vector<16x1xf32>
    %164 = arith.addf %160, %163 : vector<16x1xf32>
    %165 = math.rsqrt %164 : vector<16x1xf32>
    %166 = vector.broadcast %165 : vector<16x1xf32> to vector<16x32xf32>
    %167 = arith.mulf %162, %166 : vector<16x32xf32>
    %168 = vector.broadcast %147 : vector<1x32xf32> to vector<16x32xf32>
    %169 = arith.mulf %167, %168 : vector<16x32xf32>
    %170 = vector.broadcast %149 : vector<1x32xf32> to vector<16x32xf32>
    %171 = arith.addf %169, %170 : vector<16x32xf32>
    %c1_i32 = arith.constant 1 : i32
    %172 = arith.cmpi slt, %arg1, %c1_i32 : i32
    %173 = arith.extui %172 : i1 to i32
    %c0_i32_69 = arith.constant 0 : i32
    %174 = arith.cmpi ne, %173, %c0_i32_69 : i32
    scf.if %174 {
      %178 = vector.shape_cast %171 : vector<16x32xf32> to vector<1x16x32xf32>
      %c0_72 = arith.constant 0 : index
      %c0_73 = arith.constant 0 : index
      %c0_74 = arith.constant 0 : index
      %179 = vector.load %arg21[%c0_72, %c0_73, %c0_74] : memref<1x16x32xf32, #tpu.memory_space<vmem>>, vector<1x16x32xf32>
      tpu.vector_store %arg21[%c0_72, %c0_73, %c0_74], %178 {strides = array<i32>} : memref<1x16x32xf32, #tpu.memory_space<vmem>>, vector<1x16x32xf32>,
    } else {
    }
    %c1_i32_70 = arith.constant 1 : i32
    %175 = arith.cmpi eq, %arg1, %c1_i32_70 : i32
    %176 = arith.extui %175 : i1 to i32
    %c0_i32_71 = arith.constant 0 : i32
    %177 = arith.cmpi ne, %176, %c0_i32_71 : i32
    scf.if %177 {
      %c0_72 = arith.constant 0 : index
      %c0_73 = arith.constant 0 : index
      %178 = vector.load %arg18[%c0_72, %c0_73] : memref<32x64xbf16, #tpu.memory_space<vmem>>, vector<32x64xbf16>
      %179 = arith.truncf %171 : vector<16x32xf32> to vector<16x32xbf16>
      %cst_74 = arith.constant dense<0.000000e+00> : vector<16x64xf32>
      %180 = tpu.matmul %179, %178, %cst_74 {dimension_numbers = #tpu.dot_dimension_numbers<[1], [0], [0], [1], [0, 0, 1, 1], [], []>} : vector<16x32xbf16>, vector<32x64xbf16>, vector<16x64xf32> -> vector<16x64xf32>
      %c0_75 = arith.constant 0 : index
      %c0_76 = arith.constant 0 : index
      %181 = vector.load %arg19[%c0_75, %c0_76] : memref<1x64xf32, #tpu.memory_space<vmem>>, vector<1x64xf32>
      %182 = vector.broadcast %181 : vector<1x64xf32> to vector<16x64xf32>
      %183 = arith.addf %180, %182 : vector<16x64xf32>
      %184 = vector.shape_cast %183 : vector<16x64xf32> to vector<1x16x64xf32>
      %c0_77 = arith.constant 0 : index
      %c0_78 = arith.constant 0 : index
      %c0_79 = arith.constant 0 : index
      %185 = vector.load %arg20[%c0_77, %c0_78, %c0_79] : memref<1x16x64xf32, #tpu.memory_space<vmem>>, vector<1x16x64xf32>
      tpu.vector_store %arg20[%c0_77, %c0_78, %c0_79], %184 {strides = array<i32>} : memref<1x16x64xf32, #tpu.memory_space<vmem>>, vector<1x16x64xf32>,
    } else {
    }
    return
  }
  func.func @transform_0(%arg0: i32, %arg1: i32) -> (i32, i32, i32) {
    %c0_i32 = arith.constant 0 : i32
    %c0_i32_0 = arith.constant 0 : i32
    %c0_i32_1 = arith.constant 0 : i32
    return %arg0, %c0_i32, %c0_i32_0 : i32, i32, i32
  }
  func.func @transform_1(%arg0: i32, %arg1: i32) -> (i32, i32) {
    %c0_i32 = arith.constant 0 : i32
    %c0_i32_0 = arith.constant 0 : i32
    %c0_i32_1 = arith.constant 0 : i32
    return %c0_i32, %c0_i32_0 : i32, i32
  }
  func.func @transform_2(%arg0: i32, %arg1: i32) -> (i32, i32) {
    %c0_i32 = arith.constant 0 : i32
    %c0_i32_0 = arith.constant 0 : i32
    %c0_i32_1 = arith.constant 0 : i32
    return %c0_i32, %c0_i32_0 : i32, i32
  }
  func.func @transform_3(%arg0: i32, %arg1: i32) -> (i32, i32) {
    %c0_i32 = arith.constant 0 : i32
    %c0_i32_0 = arith.constant 0 : i32
    %c0_i32_1 = arith.constant 0 : i32
    return %c0_i32, %c0_i32_0 : i32, i32
  }
  func.func @transform_4(%arg0: i32, %arg1: i32) -> (i32, i32, i32) {
    %c0_i32 = arith.constant 0 : i32
    %c0_i32_0 = arith.constant 0 : i32
    %c0_i32_1 = arith.constant 0 : i32
    return %arg1, %c0_i32, %c0_i32_0 : i32, i32, i32
  }
  func.func @transform_5(%arg0: i32, %arg1: i32) -> (i32, i32, i32) {
    %c0_i32 = arith.constant 0 : i32
    %c0_i32_0 = arith.constant 0 : i32
    %c0_i32_1 = arith.constant 0 : i32
    return %arg1, %c0_i32, %c0_i32_0 : i32, i32, i32
  }
  func.func @transform_6(%arg0: i32, %arg1: i32) -> (i32, i32, i32) {
    %c0_i32 = arith.constant 0 : i32
    %c0_i32_0 = arith.constant 0 : i32
    %c0_i32_1 = arith.constant 0 : i32
    return %arg1, %c0_i32, %c0_i32_0 : i32, i32, i32
  }
  func.func @transform_7(%arg0: i32, %arg1: i32) -> (i32, i32, i32) {
    %c0_i32 = arith.constant 0 : i32
    %c0_i32_0 = arith.constant 0 : i32
    %c0_i32_1 = arith.constant 0 : i32
    return %arg1, %c0_i32, %c0_i32_0 : i32, i32, i32
  }
  func.func @transform_8(%arg0: i32, %arg1: i32) -> (i32, i32, i32) {
    %c0_i32 = arith.constant 0 : i32
    %c0_i32_0 = arith.constant 0 : i32
    %c0_i32_1 = arith.constant 0 : i32
    return %arg1, %c0_i32, %c0_i32_0 : i32, i32, i32
  }
  func.func @transform_9(%arg0: i32, %arg1: i32) -> (i32, i32, i32) {
    %c0_i32 = arith.constant 0 : i32
    %c0_i32_0 = arith.constant 0 : i32
    %c0_i32_1 = arith.constant 0 : i32
    return %arg1, %c0_i32, %c0_i32_0 : i32, i32, i32
  }
  func.func @transform_10(%arg0: i32, %arg1: i32) -> (i32, i32, i32) {
    %c0_i32 = arith.constant 0 : i32
    %c0_i32_0 = arith.constant 0 : i32
    %c0_i32_1 = arith.constant 0 : i32
    return %arg1, %c0_i32, %c0_i32_0 : i32, i32, i32
  }
  func.func @transform_11(%arg0: i32, %arg1: i32) -> (i32, i32, i32) {
    %c0_i32 = arith.constant 0 : i32
    %c0_i32_0 = arith.constant 0 : i32
    %c0_i32_1 = arith.constant 0 : i32
    return %arg1, %c0_i32, %c0_i32_0 : i32, i32, i32
  }
  func.func @transform_12(%arg0: i32, %arg1: i32) -> (i32, i32, i32) {
    %c0_i32 = arith.constant 0 : i32
    %c0_i32_0 = arith.constant 0 : i32
    %c0_i32_1 = arith.constant 0 : i32
    return %arg1, %c0_i32, %c0_i32_0 : i32, i32, i32
  }
  func.func @transform_13(%arg0: i32, %arg1: i32) -> (i32, i32, i32) {
    %c0_i32 = arith.constant 0 : i32
    %c0_i32_0 = arith.constant 0 : i32
    %c0_i32_1 = arith.constant 0 : i32
    return %arg1, %c0_i32, %c0_i32_0 : i32, i32, i32
  }
  func.func @transform_14(%arg0: i32, %arg1: i32) -> (i32, i32, i32) {
    %c0_i32 = arith.constant 0 : i32
    %c0_i32_0 = arith.constant 0 : i32
    %c0_i32_1 = arith.constant 0 : i32
    return %arg1, %c0_i32, %c0_i32_0 : i32, i32, i32
  }
  func.func @transform_15(%arg0: i32, %arg1: i32) -> (i32, i32, i32) {
    %c0_i32 = arith.constant 0 : i32
    %c0_i32_0 = arith.constant 0 : i32
    %c0_i32_1 = arith.constant 0 : i32
    return %arg1, %c0_i32, %c0_i32_0 : i32, i32, i32
  }
  func.func @transform_16(%arg0: i32, %arg1: i32) -> (i32, i32) {
    %c0_i32 = arith.constant 0 : i32
    %c0_i32_0 = arith.constant 0 : i32
    %c0_i32_1 = arith.constant 0 : i32
    return %c0_i32, %c0_i32_0 : i32, i32
  }
  func.func @transform_17(%arg0: i32, %arg1: i32) -> (i32, i32) {
    %c0_i32 = arith.constant 0 : i32
    %c0_i32_0 = arith.constant 0 : i32
    %c0_i32_1 = arith.constant 0 : i32
    return %c0_i32, %c0_i32_0 : i32, i32
  }
  func.func @transform_18(%arg0: i32, %arg1: i32) -> (i32, i32, i32) {
    %c0_i32 = arith.constant 0 : i32
    %c0_i32_0 = arith.constant 0 : i32
    %c0_i32_1 = arith.constant 0 : i32
    return %arg0, %c0_i32, %c0_i32_0 : i32, i32, i32
  }
}

</mosaic_0001>

<bundles_post_ra>
// kernel: spatial_transformer_encoder.1
= control target key start
LH: loop header
LB: loop body
LE: loop exit
PB: predicated region body
PF: predicated region fallthrough
CT: control target
= control target key end

     0   :  { %s2549_s27 = smov 0   ;;  %s2551_s28 = smov 0   ;;  %s2872_s0 = inlined_call_operand.vmem [shape: f32[2,16,64], index: 0, kind: input, shape index: {}]   ;;  %s2873_s1 = inlined_call_operand.vmem [shape: bf16[64,32], index: 1, kind: input, shape index: {}]   ;;  %s2874_s2 = inlined_call_operand.vmem [shape: f32[1,32], index: 2, kind: input, shape index: {}]   ;;  %s2875_s3 = inlined_call_operand.vmem [shape: f32[16,32], index: 3, kind: input, shape index: {}]   ;;  %s2876_s4 = inlined_call_operand.vmem [shape: bf16[2,32,96], index: 4, kind: input, shape index: {}]   ;;  %s2877_s5 = inlined_call_operand.vmem [shape: f32[2,1,96], index: 5, kind: input, shape index: {}]   ;;  %s2878_s6 = inlined_call_operand.vmem [shape: bf16[2,32,32], index: 6, kind: input, shape index: {}]   ;;  %s2879_s7 = inlined_call_operand.vmem [shape: f32[2,1,32], index: 7, kind: input, shape index: {}]   ;;  %s2880_s8 = inlined_call_operand.vmem [shape: f32[2,1,32], index: 8, kind: input, shape index: {}]   ;;  %s2881_s9 = inlined_call_operand.vmem [shape: f32[2,1,32], index: 9, kind: input, shape index: {}]   ;;  %s2882_s10 = inlined_call_operand.vmem [shape: bf16[2,32,64], index: 10, kind: input, shape index: {}]   ;;  %s2883_s11 = inlined_call_operand.vmem [shape: f32[2,1,64], index: 11, kind: input, shape index: {}]   ;;  %s2884_s12 = inlined_call_operand.vmem [shape: bf16[2,64,32], index: 12, kind: input, shape index: {}]   ;;  %s2885_s13 = inlined_call_operand.vmem [shape: f32[2,1,32], index: 13, kind: input, shape index: {}]   ;;  %s2886_s14 = inlined_call_operand.vmem [shape: f32[2,1,32], index: 14, kind: input, shape index: {}]   ;;  %s2887_s15 = inlined_call_operand.vmem [shape: f32[2,1,32], index: 15, kind: input, shape index: {}]   ;;  %s2888_s16 = inlined_call_operand.vmem [shape: bf16[32,64], index: 16, kind: input, shape index: {}]   ;;  %s2889_s17 = inlined_call_operand.vmem [shape: f32[1,64], index: 17, kind: input, shape index: {}]   ;;  %s2890_s18 = inlined_call_operand.vmem [shape: f32[2,16,64], index: 18, kind: output, shape index: {}]  }
   0x1   :  { %2900 = sst [smem:[#allocation11_spill]] %s2872_s0  ;;  %s2553_s29 = smov 0  }
   0x2   :  { %2901 = sst [smem:[#allocation12_spill]] %s2873_s1  ;;  %s2555_s30 = smov 0  }
   0x3   :  { %2902 = sst [smem:[#allocation13_spill]] %s2874_s2  ;;  %s2557_s0 = smov 0  }
   0x4   :  { %2903 = sst [smem:[#allocation14_spill]] %s2875_s3 }
   0x5   :  { %2904 = sst [smem:[#allocation15_spill]] %s2876_s4 }
   0x6   :  { %2905 = sst [smem:[#allocation16_spill]] %s2878_s6 }
   0x7   :  { %2906 = sst [smem:[#allocation17_spill]] %s2888_s16 }
   0x8   :  { %2907 = sst [smem:[#allocation18_spill]] %s2889_s17 }
   0x9 LB: > { %2908 = sst [smem:[#allocation3_spill]] %s2416_s27  ;;  %s37_s19 = sadd.s32 1, %s2424_s29  ;;  %s2432_s0 = sphi %s2557_s0, %s28_s0   ;;  %s2428_s30 = sphi %s2555_s30, %s2938_s30   ;;  %s2424_s29 = sphi %s2553_s29, %s2937_s29   ;;  %s2420_s28 = sphi %s2551_s28, %s2936_s28   ;;  %s2416_s27 = sphi %s2549_s27, %s2935_s27  }
   0xa   : > { %2909 = sst [smem:[#allocation4_spill]] %s2424_s29  ;;  %s40_s1 = sadd.s32 1, %s2428_s30 }
   0xb   : > { %2910 = sst [smem:[#allocation5_spill]] %s2428_s30  ;;  %p38_p0 = scmp.ge.s32.totalorder %s37_s19, 2 }
   0xc   : > { %2911 = sst [smem:[#allocation6_spill]] %s2432_s0  ;;  %p2057_p1 = scmp.ge.s32.totalorder %s2432_s0, 1 }
   0xd   : > { %p628_p2 = scmp.lt.s32.totalorder %s2432_s0, 5  ;;  %s2940_s19 = smov (%p38_p0, %s37_s19), 0 }
   0xe   : > { %2912 = sst [smem:[#allocation7_spill]] %s2940_s19  ;;  %s2942_s1 = smov (!%p38_p0, %s40_s1), %s2428_s30 }
   0xf   : > { %p629_p3 = pnand %p2057_p1, %p628_p2  ;;  %p42_p4 = scmp.ge.s32.totalorder %s2942_s1, 2 }
  0x11   : > { %s2944_s1 = smov (%p42_p4, %s2942_s1), 0  ;;  %632 = sbr.rel (%p629_p3) target bundleno = 2948 (0xb84), region = 92 }
  0x12   : > { %2913 = sst [smem:[#allocation8_spill]] %s2944_s1 }
  0x16   : > { %p726_p5 = scmp.lt.s32.totalorder %s2420_s28, 1  ;;  %p731_p6 = scmp.lt.s32.totalorder %s2416_s27, 1 }
  0x17   : > { %s2914_s23 = sld [smem:[#allocation11_spill]] }
  0x18   : > { %s2946_s28 = smov (!%p726_p5, %s2420_s28), 1  ;;  %s2916_s4 = sld [smem:[#allocation15_spill]] }
  0x19   : > { %s2583_s20 = scalar_select %p731_p6, %s2416_s27, 1 }
  0x1a   : > { %s2115_s21 = sshll.u32 %s2946_s28, 4  ;;  %s2918_s6 = sld [smem:[#allocation16_spill]] }
  0x1b   : > { %s2116_s25 = sshll.u32 %s2583_s20, 4  ;;  %s768_s22 = scalar_lea.vmem %s2885_s13, %s2583_s20 }
  0x1c   : > { %s2620_s30 = scalar_lea.vmem %s2882_s10, %s2116_s25  ;;  %s2647_s0 = scalar_lea.vmem %s2890_s18, %s2115_s21 }
  0x1d   : > { %s2588_s24 = scalar_lea.vmem %s2914_s23, %s2115_s21  ;;  %s2919_s27 = sld [smem:[#allocation3_spill]] }
  0x1e   : > { %2915 = sst [smem:[#allocation9_spill]] %s2588_s24  ;;  %s2594_s19 = scalar_lea.vmem %s2916_s4, %s2116_s25 }
  0x1f   : > { %2917 = sst [smem:[#allocation10_spill]] %s2594_s19  ;;  %s771_s19 = scalar_lea.vmem %s2886_s14, %s2583_s20 }
  0x20   : > { %s2603_s3 = scalar_lea.vmem %s2918_s6, %s2116_s25  ;;  %s2119_s6 = sshll.u32 %s2583_s20, 5 }
  0x21   : > { %s2634_s24 = scalar_lea.vmem %s2884_s12, %s2119_s6  ;;  %s774_s4 = scalar_lea.vmem %s2887_s15, %s2583_s20 }
  0x23   : > { %p2070_p7 = scmp.ne.s32.totalorder %s2919_s27, 0 }
  0x24   : > { %s2920_s6 = sld [smem:[#allocation12_spill]] (!%p2070_p7) }
  0x25   : > { %784 = sbr.rel (%p2070_p7) target bundleno = 265 (0x109), region = 96  ;;  %s2921_s23 = sld [smem:[#allocation9_spill]] (!%p2070_p7) }
  0x26   : > { %s2922_s28 = sld [smem:[#allocation13_spill]] (!%p2070_p7) }
  0x27   : > { %s2923_s26 = sld [smem:[#allocation14_spill]] (!%p2070_p7) }
  0x2a   : > { %v2323_v0 = vld [vmem:[%s2920_s6 + $0x18] sm:$0xff]   ;;  %v2434_v1 = vmov 0.0   ;;  %v2324_v2 = vld [vmem:[%s2920_s6 + $0x10] sm:$0xff]   ;;  %vm2435_vm0 = vmmov 0   ;;  %v2325_v3 = vld [vmem:[%s2920_s6 + $0x8] sm:$0xff]   ;;  %vm827_vm1 = vcmask 523264  }
  0x2b   : > { %2159 = vmatprep.subr.bf16.mxu0 %v2434_v1  ;;  %2167 = vmatprep.mubr.msk.bf16.mxu0 %vm2435_vm0, %v2434_v1  ;;  %v2326_v4 = vld [vmem:[%s2920_s6] sm:$0xff]   ;;  %v786_v6 = vld [vmem:[%s2921_s23 + $0x8] sm:$0xff]  ;;  %vm880_vm2 = vcmask 261120  }
  0x2c   : > { %2160 = vmatpush3.bf16.msra.mxu0 %v2323_v0  ;;  %v785_v5 = vld [vmem:[%s2921_s23] sm:$0xff] }
  0x2d   : > { %2161 = vmatprep.subr.bf16.mxu0 %v2434_v1  ;;  %v795_v7 = vpack.c.bf16 %v786_v6, %v785_v5  ;;  %v2071_v8 = vld [vmem:[%s2922_s28] ss:$0 sm:$0xff]  ;;  %v877_v20 = vld [vmem:[%s2923_s26 + $0x8] sm:$0xff] }
  0x2e   : > { %v876_v13 = vld [vmem:[%s2923_s26] sm:$0xff] }
  0x30   : > { %2162 = vmatpush3.bf16.msra.mxu0 %v2324_v2 }
  0x31   : > { %2163 = vmatprep.subr.bf16.mxu0 %v2434_v1 }
  0x34   : > { %2164 = vmatpush3.bf16.msra.mxu0 %v2325_v3 }
  0x35   : > { %2165 = vmatprep.subr.bf16.mxu0 %v2434_v1 }
  0x38   : > { %2166 = vmatpush3.bf16.msra.mxu0 %v2326_v4 }
  0x3b   : > { %2168 = vmatmul.mubr.msk.bf16.vlgmr.msra.gmra.mxu0 %vm827_vm1, %v795_v7 }
  0xfb   : > { %v865_v9 = vpop.f32.mrf.mxu0 }
  0xfc   : > { %v866_v10 = vadd.f32 %v2071_v8, %v865_v9 }
  0xfd   : > { %v2169_v11 = vpop.f32.mrf.mxu0 }
  0xfe   : > { %v872_v12 = vmax.f32 %v866_v10, 0.0 }
  0xff   : > { %v868_v14 = vpop.f32.mrf.mxu0 }
 0x100   : > { %v874_v15 = vmul.f32 5.656854, %v872_v12  ;;  %v869_v16 = vadd.f32 %v2071_v8, %v868_v14 }
 0x101   : > { %v2170_v17 = vpop.f32.mrf.mxu0 }
 0x102   : > { %v878_v18 = vadd.f32 %v876_v13, %v874_v15  ;;  %v873_v19 = vmax.f32 %v869_v16, 0.0 }
 0x104   : > { %881 = vst.msk [vmem:[#allocation2] sm:$0xff] %vm880_vm2, %v878_v18  ;;  %v875_v21 = vmul.f32 5.656854, %v873_v19 }
 0x106   : > { %v879_v22 = vadd.f32 %v877_v20, %v875_v21 }
 0x108   : > { %882 = vst.msk [vmem:[#allocation2 + $0x8] sm:$0xff] %vm880_vm2, %v879_v22 }
 0x109 PF: > { %s2924_s25 = sld [smem:[#allocation10_spill]]  ;;  %v2436_v24 = vmov 0.0   ;;  %vm2437_vm3 = vmmov 0   ;;  %vm909_vm4 = vcmask 261120   ;;  %s2925_s17 = scalar_lea.vmem %s2877_s5, %s2583_s20  ;;  %vm958_vm5 = vcmask 64512  }
 0x10a   : > { %2171 = vmatprep.subr.bf16.mxu0 %v2436_v24  ;;  %2179 = vmatprep.subr.bf16.mxu1 %v2436_v24  ;;  %v2077_v30 = vld [vmem:[%s2925_s17] ss:$0 sm:$0xff]  ;;  %s2438_s27 = smov 120   ;;  %s2439_s28 = smov 96   ;;  %vm1006_vm6 = vcmask 130048   ;;  %vm1468_vm7 = vcmask 195584  }
 0x10b   : > { %2175 = vmatprep.mubr.msk.bf16.mxu0 %vm2437_vm3, %v2436_v24  ;;  %v2679_v26 = vld [vmem:[#allocation2] sm:$0xff]  ;;  %2181 = vmatprep.mubr.msk.bf16.mxu1 %vm2437_vm3, %v2436_v24  ;;  %s2440_s2 = smov 80   ;;  %s2441_s1 = smov 88   ;;  %vm1696_vm8 = vcmask 523264  }
 0x10c   : > { %s2442_s23 = smov 72   ;;  %s2443_s21 = smov 112  }
 0x10d   : > { %s2445_s29 = smov 56   ;;  %s2446_s16 = smov 64  }
 0x10e   : > { %s2447_s17 = smov 48  }
 0x10f   : > { %v2342_v23 = vld [vmem:[%s2924_s25 + $0x8] sm:$0xff]   ;;  %v2343_v25 = vld [vmem:[%s2924_s25] sm:$0xff]   ;;  %s2444_s25 = smov 104  }
 0x110   : > { %2172 = vmatpush3.bf16.msra.mxu0 %v2342_v23  ;;  %v2681_v27 = vld [vmem:[#allocation2 + $0x8] sm:$0xff] }
 0x111   : > { %2173 = vmatprep.subr.bf16.mxu0 %v2436_v24  ;;  %v889_v28 = vpack.c.bf16 %v2681_v27, %v2679_v26 }
 0x114   : > { %2174 = vmatpush3.bf16.msra.mxu0 %v2343_v25 }
 0x115   : > { %2185 = vmatprep.subr.bf16.mxu0 %v2436_v24 }
 0x117   : > { %2176 = vmatmul.mubr.msk.bf16.vlgmr.msra.gmra.mxu0 %vm909_vm4, %v889_v28 }
 0x118   : > { %2187 = vmatprep.mubr.msk.bf16.mxu0 %vm2437_vm3, %v2436_v24 }
 0x1d7   : > { %v947_v29 = vpop.f32.mrf.mxu0 }
 0x1d8   : > { %v948_v33 = vadd.f32 %v2077_v30, %v947_v29 }
 0x1d9   : > { %v2177_v31 = vpop.f32.mrf.mxu0 }
 0x1db   : > { %v950_v32 = vpop.f32.mrf.mxu0 }
 0x1dc   : > { %v951_v34 = vadd.f32 %v2077_v30, %v950_v32 }
 0x1dd   : > { %v2178_v35 = vpop.f32.mrf.mxu0 }
 0x1de   : > { %v2697_v36 = vpack.c.bf16 %v951_v34, %v948_v33 }
 0x1e0   : > { %1077 = vrot.lane.b32.xlu1 %v2697_v36, %s2438_s27  ;;  %956 = vrot.lane.b32.xlu0 %v2697_v36, %s2439_s28  ;;  %s2448_s27 = smov 40   ;;  %s2449_s28 = smov 8  }
 0x1e4   : > { %1200 = vrot.lane.b32.xlu1 %v2697_v36, %s2440_s2  ;;  %1079 = vrot.lane.b32.xlu0 %v2697_v36, %s2441_s1  ;;  %s2450_s2 = smov 16   ;;  %s2451_s1 = smov 24  }
 0x1e8   : > { %1321 = vrot.lane.b32.xlu1 %v2697_v36, %s2442_s23  ;;  %1198 = vrot.lane.b32.xlu0 %v2697_v36, %s2443_s21  ;;  %s2926_s21 = scalar_lea.vmem %s2879_s7, %s2583_s20 }
 0x1ec   : > { %1319 = vrot.lane.b32.xlu0 %v2697_v36, %s2444_s25  ;;  %s2930_s25 = sld [smem:[#allocation3_spill]] }
 0x1f2   : > { %p2107_p8 = scmp.ge.s32.totalorder %s2930_s25, 1 }
 0x252   : > { %v957_v37 = vpop.permute.xlu0 %956  ;;  %v1078_v40 = vpop.permute.xlu1 %1077 }
 0x253   : > { %v963_v38 = vsel %vm958_vm5, %v957_v37, 0 }
 0x254   : > { %2180 = vmatpush3.bf16.xpose.msra.mxu1 %v963_v38 }
 0x255   : > { %2191 = vmatprep.subr.bf16.mxu1 %v2436_v24 }
 0x256   : > { %v1080_v39 = vpop.permute.xlu0 %1079  ;;  %v1201_v42 = vpop.permute.xlu1 %1200 }
 0x257   : > { %v1085_v41 = vsel %vm958_vm5, %v1080_v39, 0  ;;  %v1206_v43 = vsel %vm958_vm5, %v1201_v42, 0 }
 0x25a   : > { %v1322_v44 = vpop.permute.xlu1 %1321  ;;  %v1199_v45 = vpop.permute.xlu0 %1198 }
 0x25b   : > { %2182 = vmatmul.mubr.msk.bf16.vlgmr.msra.gmra.mxu1 %vm958_vm5, %v2697_v36  ;;  %v1327_v46 = vsel %vm958_vm5, %v1322_v44, 0 }
 0x25c   : > { %2192 = vmatpush3.bf16.xpose.msra.mxu1 %v1085_v41  ;;  %2193 = vmatprep.mubr.msk.bf16.mxu1 %vm2437_vm3, %v2436_v24 }
 0x25d   : > { %2203 = vmatprep.subr.bf16.mxu1 %v2436_v24 }
 0x25e   : > { %v1320_v47 = vpop.permute.xlu0 %1319 }
 0x263   : > { %2194 = vmatmul.mubr.msk.bf16.vlgmr.msra.gmra.mxu1 %vm958_vm5, %v1078_v40 }
 0x264   : > { %2204 = vmatpush3.bf16.xpose.msra.mxu1 %v1206_v43  ;;  %2205 = vmatprep.mubr.msk.bf16.mxu1 %vm2437_vm3, %v2436_v24 }
 0x265   : > { %2215 = vmatprep.subr.bf16.mxu1 %v2436_v24 }
 0x26b   : > { %2206 = vmatmul.mubr.msk.bf16.vlgmr.msra.gmra.mxu1 %vm958_vm5, %v1199_v45 }
 0x26c   : > { %2216 = vmatpush3.bf16.xpose.msra.mxu1 %v1327_v46  ;;  %2217 = vmatprep.mubr.msk.bf16.mxu1 %vm2437_vm3, %v2436_v24 }
 0x26d   : > { %2227 = vmatprep.subr.bf16.mxu1 %v2436_v24 }
 0x273   : > { %2218 = vmatmul.mubr.msk.bf16.vlgmr.msra.gmra.mxu1 %vm958_vm5, %v1320_v47 }
 0x274   : > { %2231 = vmatprep.mubr.msk.bf16.mxu1 %vm2437_vm3, %v2436_v24 }
 0x31b   : > { %v999_v48 = vpop.f32.mrf.mxu1 }
 0x31c   : > { %v1007_v49 = vsel %vm1006_vm6, %v999_v48, -inf }
 0x31d   : > { %1008 = vmax.xlane.f32.xlu1 %v1007_v49  ;;  %v2183_v50 = vpop.f32.mrf.mxu1 }
 0x31f   : > { %v1002_v51 = vpop.f32.mrf.mxu1 }
 0x320   : > { %v1010_v52 = vsel %vm1006_vm6, %v1002_v51, -inf }
 0x321   : > { %1011 = vmax.xlane.f32.xlu0 %v1010_v52  ;;  %v2184_v53 = vpop.f32.mrf.mxu1 }
 0x323   : > { %v1121_v54 = vpop.f32.mrf.mxu1 }
 0x324   : > { %v1128_v55 = vsel %vm1006_vm6, %v1121_v54, -inf }
 0x325   : > { %1129 = vmax.xlane.f32.xlu0 %v1128_v55  ;;  %v2195_v56 = vpop.f32.mrf.mxu1 }
 0x327   : > { %v1124_v57 = vpop.f32.mrf.mxu1 }
 0x328   : > { %v1131_v58 = vsel %vm1006_vm6, %v1124_v57, -inf }
 0x329   : > { %1132 = vmax.xlane.f32.xlu1 %v1131_v58  ;;  %v2196_v59 = vpop.f32.mrf.mxu1 }
 0x32b   : > { %v1242_v60 = vpop.f32.mrf.mxu1 }
 0x32c   : > { %v1249_v61 = vsel %vm1006_vm6, %v1242_v60, -inf }
 0x32d   : > { %1250 = vmax.xlane.f32.xlu0 %v1249_v61  ;;  %v2207_v62 = vpop.f32.mrf.mxu1 }
 0x32f   : > { %v1245_v63 = vpop.f32.mrf.mxu1 }
 0x330   : > { %v1252_v0 = vsel %vm1006_vm6, %v1245_v63, -inf }
 0x331   : > { %1253 = vmax.xlane.f32.xlu1 %v1252_v0  ;;  %v2208_v1 = vpop.f32.mrf.mxu1 }
 0x333   : > { %v1363_v2 = vpop.f32.mrf.mxu1 }
 0x334   : > { %v1370_v3 = vsel %vm1006_vm6, %v1363_v2, -inf }
 0x335   : > { %1371 = vmax.xlane.f32.xlu0 %v1370_v3  ;;  %v2219_v4 = vpop.f32.mrf.mxu1 }
 0x337   : > { %v1366_v5 = vpop.f32.mrf.mxu1 }
 0x338   : > { %v1373_v6 = vsel %vm1006_vm6, %v1366_v5, -inf }
 0x339   : > { %1374 = vmax.xlane.f32.xlu1 %v1373_v6  ;;  %v2220_v7 = vpop.f32.mrf.mxu1 }
 0x3a6   : > { %v1009_v8 = vpop.xlane.xlu1 %1008 }
 0x3a7   : > { %v1013_v9 = vsub.f32 %v999_v48, %v1009_v8 }
 0x3a9   : > { %v1015_v10 = vmul.f32 1.442695, %v1013_v9 }
 0x3aa   : > { %v1012_v11 = vpop.xlane.xlu0 %1011 }
 0x3ab   : > { %2352 = vpow2.f32 %v1015_v10  ;;  %v1014_v12 = vsub.f32 %v1002_v51, %v1012_v11 }
 0x3ad   : > { %v1017_v13 = vmul.f32 1.442695, %v1014_v12 }
 0x3ae   : > { %v1130_v14 = vpop.xlane.xlu0 %1129 }
 0x3af   : > { %2354 = vpow2.f32 %v1017_v13  ;;  %v1134_v15 = vsub.f32 %v1121_v54, %v1130_v14 }
 0x3b1   : > { %v1136_v16 = vmul.f32 1.442695, %v1134_v15 }
 0x3b2   : > { %v1133_v23 = vpop.xlane.xlu1 %1132 }
 0x3b3   : > { %2356 = vpow2.f32 %v1136_v16  ;;  %v1135_v25 = vsub.f32 %v1124_v57, %v1133_v23 }
 0x3b5   : > { %v1138_v31 = vmul.f32 1.442695, %v1135_v25 }
 0x3b6   : > { %v1251_v28 = vpop.xlane.xlu0 %1250 }
 0x3b7   : > { %v1255_v30 = vsub.f32 %v1242_v60, %v1251_v28  ;;  %2358 = vpow2.f32 %v1138_v31 }
 0x3b8   : > { %v2353_v17 = vpop.eup %2352 }
 0x3b9   : > { %v1019_v18 = vsel %vm1006_vm6, %v2353_v17, 0.0  ;;  %v1257_v35 = vmul.f32 1.442695, %v1255_v30 }
 0x3ba   : > { %1020 = vadd.xlane.f32.xlu0 %v1019_v18  ;;  %v1254_v29 = vpop.xlane.xlu1 %1253 }
 0x3bb   : > { %v1256_v32 = vsub.f32 %v1245_v63, %v1254_v29  ;;  %2360 = vpow2.f32 %v1257_v35  ;;  %v2344_v29 = vld [vmem:[%s2603_s3 + $0x8] sm:$0xff]  }
 0x3bc   : > { %v2355_v19 = vpop.eup %2354  ;;  %2228 = vmatpush3.bf16.msra.mxu1 %v2344_v29 }
 0x3bd   : > { %v1022_v20 = vsel %vm1006_vm6, %v2355_v19, 0.0  ;;  %v1259_v38 = vmul.f32 1.442695, %v1256_v32  ;;  %2229 = vmatprep.subr.bf16.mxu1 %v2436_v24 }
 0x3be   : > { %1023 = vadd.xlane.f32.xlu1 %v1022_v20  ;;  %v1372_v33 = vpop.xlane.xlu0 %1371 }
 0x3bf   : > { %v1376_v37 = vsub.f32 %v1363_v2, %v1372_v33  ;;  %2362 = vpow2.f32 %v1259_v38 }
 0x3c0   : > { %v2737_v21 = vpop.eup %2356 }
 0x3c1   : > { %v1140_v22 = vsel %vm1006_vm6, %v2737_v21, 0.0  ;;  %v1378_v40 = vmul.f32 1.442695, %v1376_v37 }
 0x3c2   : > { %1141 = vadd.xlane.f32.xlu0 %v1140_v22  ;;  %v1375_v34 = vpop.xlane.xlu1 %1374 }
 0x3c3   : > { %v1377_v39 = vsub.f32 %v1366_v5, %v1375_v34  ;;  %2364 = vpow2.f32 %v1378_v40  ;;  %v2345_v34 = vld [vmem:[%s2603_s3] sm:$0xff]  }
 0x3c4   : > { %v2359_v42 = vpop.eup %2358  ;;  %2230 = vmatpush3.bf16.msra.mxu1 %v2345_v34 }
 0x3c5   : > { %v1380_v41 = vmul.f32 1.442695, %v1377_v39  ;;  %v1143_v44 = vsel %vm1006_vm6, %v2359_v42, 0.0  ;;  %2243 = vmatprep.subr.bf16.mxu1 %v2436_v24 }
 0x3c7   : > { %2366 = vpow2.f32 %v1380_v41 }
 0x3c8   : > { %v2361_v43 = vpop.eup %2360 }
 0x3c9   : > { %v1261_v48 = vsel %vm1006_vm6, %v2361_v43, 0.0 }
 0x3cc   : > { %v2363_v45 = vpop.eup %2362 }
 0x3cd   : > { %v1264_v47 = vsel %vm1006_vm6, %v2363_v45, 0.0 }
 0x3cf   : > { %1151 = vrot.lane.b32.xlu1 %v2697_v36, %s2445_s29  ;;  %s2927_s29 = scalar_lea.vmem %s2880_s8, %s2583_s20 }
 0x3d0   : > { %v2744_v46 = vpop.eup %2364 }
 0x3d1   : > { %v1382_v51 = vsel %vm1006_vm6, %v2744_v46, 0.0 }
 0x3d4   : > { %v2367_v49 = vpop.eup %2366 }
 0x3d5   : > { %v1385_v50 = vsel %vm1006_vm6, %v2367_v49, 0.0 }
 0x3d8   : > { %1030 = vrot.lane.b32.xlu0 %v2697_v36, %s2446_s16 }
 0x3f3   : > { %1144 = vadd.xlane.f32.xlu1 %v1143_v44 }
 0x3f7   : > { %1265 = vadd.xlane.f32.xlu1 %v1264_v47  ;;  %1262 = vadd.xlane.f32.xlu0 %v1261_v48 }
 0x3fb   : > { %1386 = vadd.xlane.f32.xlu1 %v1385_v50  ;;  %1383 = vadd.xlane.f32.xlu0 %v1382_v51 }
 0x40c   : > { %1272 = vrot.lane.b32.xlu1 %v2697_v36, %s2447_s17 }
 0x411   : > { %1393 = vrot.lane.b32.xlu0 %v2697_v36, %s2448_s27  ;;  %s2928_s27 = scalar_lea.vmem %s2881_s9, %s2583_s20 }
 0x443   : > { %v1021_v52 = vpop.xlane.xlu0 %1020 }
 0x444   : > { %2368 = vrcp.f32 %v1021_v52 }
 0x447   : > { %v1024_v53 = vpop.xlane.xlu1 %1023 }
 0x448   : > { %2370 = vrcp.f32 %v1024_v53 }
 0x44b   : > { %v1142_v54 = vpop.xlane.xlu0 %1141  ;;  %v1152_v61 = vpop.permute.xlu1 %1151 }
 0x44c   : > { %2372 = vrcp.f32 %v1142_v54 }
 0x44f   : > { %v1031_v55 = vpop.permute.xlu0 %1030 }
 0x450   : > { %2186 = vmatpush3.bf16.msra.mxu0 %v1031_v55 }
 0x451   : > { %2197 = vmatprep.subr.bf16.mxu0 %v2436_v24  ;;  %v2369_v56 = vpop.eup %2368 }
 0x452   : > { %v1027_v58 = vmul.f32 %v2369_v56, %v2353_v17 }
 0x455   : > { %v2371_v57 = vpop.eup %2370 }
 0x456   : > { %v1028_v59 = vmul.f32 %v2371_v57, %v2355_v19 }
 0x458   : > { %v1029_v60 = vpack.c.bf16 %v1028_v59, %v1027_v58 }
 0x459   : > { %v2373_v2 = vpop.eup %2372 }
 0x45a   : > { %2188 = vmatmul.mubr.msk.bf16.vlgmr.msra.gmra.mxu0 %vm1006_vm6, %v1029_v60  ;;  %v1148_v4 = vmul.f32 %v2373_v2, %v2737_v21  ;;  %v2089_v60 = vld [vmem:[%s2926_s21] ss:$0 sm:$0xff] }
 0x45b   : > { %2198 = vmatpush3.bf16.msra.mxu0 %v1152_v61  ;;  %2199 = vmatprep.mubr.msk.bf16.mxu0 %vm2437_vm3, %v2436_v24 }
 0x45c   : > { %2209 = vmatprep.subr.bf16.mxu0 %v2436_v24 }
 0x47c   : > { %v1145_v36 = vpop.xlane.xlu1 %1144 }
 0x47d   : > { %2374 = vrcp.f32 %v1145_v36 }
 0x480   : > { %v1266_v62 = vpop.xlane.xlu1 %1265  ;;  %v1263_v63 = vpop.xlane.xlu0 %1262 }
 0x481   : > { %2376 = vrcp.f32 %v1266_v62 }
 0x482   : > { %2378 = vrcp.f32 %v1263_v63 }
 0x484   : > { %v1387_v0 = vpop.xlane.xlu1 %1386  ;;  %v1384_v1 = vpop.xlane.xlu0 %1383 }
 0x485   : > { %2380 = vrcp.f32 %v1387_v0 }
 0x486   : > { %2382 = vrcp.f32 %v1384_v1 }
 0x488   : > { %v1273_v9 = vpop.permute.xlu1 %1272  ;;  %v1394_v15 = vpop.permute.xlu0 %1393 }
 0x48a   : > { %v2375_v3 = vpop.eup %2374 }
 0x48b   : > { %v1149_v5 = vmul.f32 %v2375_v3, %v2359_v42 }
 0x48d   : > { %v1150_v6 = vpack.c.bf16 %v1149_v5, %v1148_v4 }
 0x48e   : > { %v2377_v7 = vpop.eup %2376 }
 0x48f   : > { %v2379_v8 = vpop.eup %2378  ;;  %2200 = vmatmul.mubr.msk.bf16.vlgmr.msra.gmra.mxu0 %vm1006_vm6, %v1150_v6  ;;  %v1270_v11 = vmul.f32 %v2377_v7, %v2363_v45 }
 0x490   : > { %2210 = vmatpush3.bf16.msra.mxu0 %v1273_v9  ;;  %2211 = vmatprep.mubr.msk.bf16.mxu0 %vm2437_vm3, %v2436_v24  ;;  %v1269_v10 = vmul.f32 %v2379_v8, %v2361_v43 }
 0x491   : > { %2221 = vmatprep.subr.bf16.mxu0 %v2436_v24 }
 0x492   : > { %v2381_v12 = vpop.eup %2380  ;;  %v1271_v13 = vpack.c.bf16 %v1270_v11, %v1269_v10 }
 0x493   : > { %v2383_v14 = vpop.eup %2382  ;;  %v1391_v17 = vmul.f32 %v2381_v12, %v2367_v49 }
 0x494   : > { %v1390_v16 = vmul.f32 %v2383_v14, %v2744_v46 }
 0x496   : > { %v1392_v18 = vpack.c.bf16 %v1391_v17, %v1390_v16  ;;  %v2348_v16 = vld [vmem:[%s2634_s24 + $0x18] sm:$0xff]  }
 0x497   : > { %2212 = vmatmul.mubr.msk.bf16.vlgmr.msra.gmra.mxu0 %vm1006_vm6, %v1271_v13 }
 0x498   : > { %2222 = vmatpush3.bf16.msra.mxu0 %v1394_v15  ;;  %2223 = vmatprep.mubr.msk.bf16.mxu0 %vm2437_vm3, %v2436_v24  ;;  %v2347_v15 = vld [vmem:[%s2620_s30] sm:$0xff]  }
 0x499   : > { %2235 = vmatprep.subr.bf16.mxu0 %v2436_v24 }
 0x49f   : > { %2224 = vmatmul.mubr.msk.bf16.vlgmr.msra.gmra.mxu0 %vm1006_vm6, %v1392_v18 }
 0x4a0   : > { %2239 = vmatprep.mubr.msk.bf16.mxu0 %vm2437_vm3, %v2436_v24 }
 0x51a   : > { %v1070_v19 = vpop.f32.mrf.mxu0 }
 0x51c   : > { %v2189_v20 = vpop.f32.mrf.mxu0 }
 0x51e   : > { %v1073_v21 = vpop.f32.mrf.mxu0 }
 0x520   : > { %v2190_v22 = vpop.f32.mrf.mxu0 }
 0x54f   : > { %v1191_v23 = vpop.f32.mrf.mxu0 }
 0x551   : > { %v2201_v25 = vpop.f32.mrf.mxu0 }
 0x553   : > { %v1194_v28 = vpop.f32.mrf.mxu0 }
 0x554   : > { %v2327_v30 = vpack.i.bf16 %v1194_v28, %v1191_v23  ;;  %v2093_v28 = vld [vmem:[%s2927_s29] ss:$0 sm:$0xff] }
 0x555   : > { %v2202_v31 = vpop.f32.mrf.mxu0 }
 0x556   : > { %2328 = vrot.lane.b32.xlu1 %v2327_v30, %s2449_s28 }
 0x557   : > { %v1312_v32 = vpop.f32.mrf.mxu0 }
 0x559   : > { %v2213_v33 = vpop.f32.mrf.mxu0 }
 0x55b   : > { %v1315_v35 = vpop.f32.mrf.mxu0 }
 0x55c   : > { %v2332_v37 = vpack.i.bf16 %v1315_v35, %v1312_v32  ;;  %v2094_v32 = vld [vmem:[%s2928_s27] ss:$0 sm:$0xff] }
 0x55d   : > { %v2214_v38 = vpop.f32.mrf.mxu0 }
 0x55e   : > { %2333 = vrot.lane.b32.xlu0 %v2332_v37, %s2450_s2  ;;  %v2349_v38 = vld [vmem:[%s2634_s24 + $0x10] sm:$0xff]  }
 0x55f   : > { %v1433_v39 = vpop.f32.mrf.mxu0 }
 0x561   : > { %v2225_v40 = vpop.f32.mrf.mxu0 }
 0x562   : > { %v2351_v40 = vld [vmem:[%s2634_s24] sm:$0xff]  }
 0x563   : > { %v1436_v41 = vpop.f32.mrf.mxu0 }
 0x564   : > { %v2337_v42 = vpack.i.bf16 %v1436_v41, %v1433_v39  ;;  %v2350_v39 = vld [vmem:[%s2634_s24 + $0x8] sm:$0xff]  }
 0x565   : > { %v2226_v43 = vpop.f32.mrf.mxu0 }
 0x566   : > { %2338 = vrot.lane.b32.xlu1 %v2337_v42, %s2451_s1  ;;  %s2929_s1 = scalar_lea.vmem %s2883_s11, %s2583_s20 }
 0x567   : > { %v2095_v41 = vld [vmem:[%s2929_s1] ss:$0 sm:$0xff] }
 0x5c8   : > { %v2329_v44 = vpop.permute.xlu1 %2328 }
 0x5c9   : > { %v2331_v46 = vunpack.i.h.bf16 %v2329_v44  ;;  %v2330_v47 = vunpack.i.l.bf16 %v2329_v44 }
 0x5cb   : > { %v1465_v51 = vsel %vm958_vm5, %v1073_v21, %v2331_v46  ;;  %v1464_v52 = vsel %vm958_vm5, %v1070_v19, %v2330_v47 }
 0x5d0   : > { %v2334_v45 = vpop.permute.xlu0 %2333 }
 0x5d1   : > { %v2336_v48 = vunpack.i.h.bf16 %v2334_v45  ;;  %v2335_v49 = vunpack.i.l.bf16 %v2334_v45 }
 0x5d3   : > { %v1467_v55 = vsel %vm1006_vm6, %v1465_v51, %v2336_v48  ;;  %v1466_v56 = vsel %vm1006_vm6, %v1464_v52, %v2335_v49 }
 0x5d8   : > { %v2339_v50 = vpop.permute.xlu1 %2338 }
 0x5d9   : > { %v2341_v53 = vunpack.i.h.bf16 %v2339_v50  ;;  %v2340_v54 = vunpack.i.l.bf16 %v2339_v50 }
 0x5db   : > { %v1470_v57 = vsel %vm1468_vm7, %v1467_v55, %v2341_v53  ;;  %v1469_v58 = vsel %vm1468_vm7, %v1466_v56, %v2340_v54 }
 0x5dc   : > { %v1475_v59 = vpack.c.bf16 %v1470_v57, %v1469_v58 }
 0x5de   : > { %2232 = vmatmul.mubr.msk.bf16.vlgmr.msra.gmra.mxu1 %vm909_vm4, %v1475_v59 }
 0x5df   : > { %2251 = vmatprep.mubr.msk.bf16.mxu1 %vm2437_vm3, %v2436_v24  ;;  %2244 = vmatpush3.bf16.msra.mxu1 %v2348_v16 }
 0x5e0   : > { %2245 = vmatprep.subr.bf16.mxu1 %v2436_v24 }
 0x5e3   : > { %2246 = vmatpush3.bf16.msra.mxu1 %v2349_v38 }
 0x5e4   : > { %2247 = vmatprep.subr.bf16.mxu1 %v2436_v24 }
 0x5e7   : > { %2248 = vmatpush3.bf16.msra.mxu1 %v2350_v39 }
 0x5e8   : > { %2249 = vmatprep.subr.bf16.mxu1 %v2436_v24 }
 0x5eb   : > { %2250 = vmatpush3.bf16.msra.mxu1 %v2351_v40 }
 0x69e   : > { %v1532_v61 = vpop.f32.mrf.mxu1 }
 0x69f   : > { %v1533_v36 = vadd.f32 %v2089_v60, %v1532_v61 }
 0x6a0   : > { %v2233_v62 = vpop.f32.mrf.mxu1 }
 0x6a1   : > { %v1539_v63 = vadd.f32 %v1533_v36, %v2679_v26 }
 0x6a2   : > { %v1535_v0 = vpop.f32.mrf.mxu1 }
 0x6a3   : > { %v1536_v1 = vadd.f32 %v2089_v60, %v1535_v0  ;;  %v1543_v2 = vsel %vm909_vm4, %v1539_v63, 0.0 }
 0x6a4   : > { %1544 = vadd.xlane.f32.xlu0 %v1543_v2  ;;  %v2234_v3 = vpop.f32.mrf.mxu1 }
 0x6a5   : > { %v1540_v4 = vadd.f32 %v1536_v1, %v2681_v27  ;;  %v2346_v27 = vld [vmem:[%s2620_s30 + $0x8] sm:$0xff]  }
 0x6a6   : > { %2236 = vmatpush3.bf16.msra.mxu0 %v2346_v27 }
 0x6a7   : > { %v1546_v5 = vsel %vm909_vm4, %v1540_v4, 0.0  ;;  %2237 = vmatprep.subr.bf16.mxu0 %v2436_v24  ;;  %v2099_v24 = vld [vmem:[%s768_s22] ss:$0 sm:$0xff] }
 0x6a8   : > { %1547 = vadd.xlane.f32.xlu1 %v1546_v5 }
 0x6aa   : > { %2238 = vmatpush3.bf16.msra.mxu0 %v2347_v15 }
 0x72d   : > { %v1545_v6 = vpop.xlane.xlu0 %1544 }
 0x72e   : > { %v1550_v7 = vmul.f32 0.03125, %v1545_v6 }
 0x730   : > { %v1552_v8 = vsub.f32 %v1539_v63, %v1550_v7 }
 0x731   : > { %v1548_v9 = vpop.xlane.xlu1 %1547 }
 0x732   : > { %v1551_v10 = vmul.f32 0.03125, %v1548_v9  ;;  %v1554_v26 = vmul.f32 %v1552_v8, %v1552_v8 }
 0x734   : > { %v1553_v11 = vsub.f32 %v1540_v4, %v1551_v10  ;;  %v1556_v12 = vsel %vm909_vm4, %v1554_v26, 0.0 }
 0x735   : > { %1557 = vadd.xlane.f32.xlu0 %v1556_v12  ;;  %v2105_v12 = vld [vmem:[%s771_s19] ss:$0 sm:$0xff] }
 0x736   : > { %v1555_v13 = vmul.f32 %v1553_v11, %v1553_v11 }
 0x738   : > { %v1559_v14 = vsel %vm909_vm4, %v1555_v13, 0.0 }
 0x739   : > { %1560 = vadd.xlane.f32.xlu0 %v1559_v14  ;;  %v2106_v14 = vld [vmem:[%s774_s4] ss:$0 sm:$0xff] }
 0x7be   : > { %v1558_v17 = vpop.xlane.xlu0 %1557 }
 0x7bf   : > { %v1562_v18 = vmul.f32 0.03125, %v1558_v17 }
 0x7c1   : > { %v1564_v19 = vadd.f32 1e-05, %v1562_v18 }
 0x7c2   : > { %v1561_v20 = vpop.xlane.xlu0 %1560 }
 0x7c3   : > { %2384 = vrsqrt.f32 %v1564_v19  ;;  %v1563_v21 = vmul.f32 0.03125, %v1561_v20 }
 0x7c5   : > { %v1565_v22 = vadd.f32 1e-05, %v1563_v21 }
 0x7c7   : > { %2386 = vrsqrt.f32 %v1565_v22 }
 0x7d0   : > { %v2385_v23 = vpop.eup %2384 }
 0x7d1   : > { %v1568_v25 = vmul.f32 %v2385_v23, %v1552_v8 }
 0x7d3   : > { %v1576_v31 = vmul.f32 %v2093_v28, %v1568_v25 }
 0x7d4   : > { %v2387_v29 = vpop.eup %2386 }
 0x7d5   : > { %v1569_v30 = vmul.f32 %v2387_v29, %v1553_v11  ;;  %v1584_v34 = vadd.f32 %v2094_v32, %v1576_v31 }
 0x7d7   : > { %v1577_v33 = vmul.f32 %v2093_v28, %v1569_v30 }
 0x7d9   : > { %v1585_v35 = vadd.f32 %v2094_v32, %v1577_v33 }
 0x7db   : > { %v1590_v37 = vpack.c.bf16 %v1585_v35, %v1584_v34 }
 0x7dd   : > { %2240 = vmatmul.mubr.msk.bf16.vlgmr.msra.gmra.mxu0 %vm909_vm4, %v1590_v37 }
 0x89d   : > { %v1647_v42 = vpop.f32.mrf.mxu0 }
 0x89e   : > { %v1648_v44 = vadd.f32 %v2095_v41, %v1647_v42 }
 0x89f   : > { %v2241_v43 = vpop.f32.mrf.mxu0 }
 0x8a0   : > { %v1654_v48 = vmax.f32 %v1648_v44, 0.0 }
 0x8a1   : > { %v1650_v45 = vpop.f32.mrf.mxu0 }
 0x8a2   : > { %v1651_v46 = vadd.f32 %v2095_v41, %v1650_v45 }
 0x8a3   : > { %v2242_v47 = vpop.f32.mrf.mxu0 }
 0x8a4   : > { %v1655_v49 = vmax.f32 %v1651_v46, 0.0 }
 0x8a6   : > { %v1664_v50 = vpack.c.bf16 %v1655_v49, %v1654_v48 }
 0x8a8   : > { %2252 = vmatmul.mubr.msk.bf16.vlgmr.msra.gmra.mxu1 %vm1696_vm8, %v1664_v50 }
 0x968   : > { %v1734_v51 = vpop.f32.mrf.mxu1 }
 0x969   : > { %v1735_v52 = vadd.f32 %v2099_v24, %v1734_v51 }
 0x96a   : > { %v2253_v53 = vpop.f32.mrf.mxu1 }
 0x96b   : > { %v1741_v54 = vadd.f32 %v1735_v52, %v1584_v34 }
 0x96c   : > { %v1737_v55 = vpop.f32.mrf.mxu1 }
 0x96d   : > { %v1738_v56 = vadd.f32 %v2099_v24, %v1737_v55  ;;  %v1745_v57 = vsel %vm909_vm4, %v1741_v54, 0.0 }
 0x96e   : > { %1746 = vadd.xlane.f32.xlu1 %v1745_v57  ;;  %v2254_v58 = vpop.f32.mrf.mxu1 }
 0x96f   : > { %v1742_v59 = vadd.f32 %v1738_v56, %v1585_v35 }
 0x971   : > { %v1748_v60 = vsel %vm909_vm4, %v1742_v59, 0.0 }
 0x972   : > { %1749 = vadd.xlane.f32.xlu0 %v1748_v60 }
 0x9f7   : > { %v1747_v61 = vpop.xlane.xlu1 %1746 }
 0x9f8   : > { %v1751_v36 = vmul.f32 0.03125, %v1747_v61 }
 0x9fa   : > { %v1753_v62 = vsub.f32 %v1741_v54, %v1751_v36 }
 0x9fb   : > { %v1750_v63 = vpop.xlane.xlu0 %1749 }
 0x9fc   : > { %v1752_v0 = vmul.f32 0.03125, %v1750_v63  ;;  %v1755_v1 = vmul.f32 %v1753_v62, %v1753_v62 }
 0x9fe   : > { %v1754_v2 = vsub.f32 %v1742_v59, %v1752_v0  ;;  %v1757_v3 = vsel %vm909_vm4, %v1755_v1, 0.0 }
 0x9ff   : > { %1758 = vadd.xlane.f32.xlu1 %v1757_v3 }
 0xa00   : > { %v1756_v4 = vmul.f32 %v1754_v2, %v1754_v2 }
 0xa02   : > { %v1760_v5 = vsel %vm909_vm4, %v1756_v4, 0.0 }
 0xa03   : > { %1761 = vadd.xlane.f32.xlu0 %v1760_v5 }
 0xa88   : > { %v1759_v6 = vpop.xlane.xlu1 %1758 }
 0xa89   : > { %v1763_v7 = vmul.f32 0.03125, %v1759_v6 }
 0xa8b   : > { %v1765_v8 = vadd.f32 1e-05, %v1763_v7 }
 0xa8c   : > { %v1762_v9 = vpop.xlane.xlu0 %1761 }
 0xa8d   : > { %2388 = vrsqrt.f32 %v1765_v8  ;;  %v1764_v10 = vmul.f32 0.03125, %v1762_v9 }
 0xa8f   : > { %v1766_v26 = vadd.f32 1e-05, %v1764_v10 }
 0xa91   : > { %2390 = vrsqrt.f32 %v1766_v26 }
 0xa9a   : > { %v2389_v11 = vpop.eup %2388 }
 0xa9b   : > { %v1769_v13 = vmul.f32 %v2389_v11, %v1753_v62 }
 0xa9d   : > { %v1777_v27 = vmul.f32 %v2105_v12, %v1769_v13 }
 0xa9e   : > { %v2391_v15 = vpop.eup %2390 }
 0xa9f   : > { %v1785_v16 = vadd.f32 %v2106_v14, %v1777_v27  ;;  %v1770_v17 = vmul.f32 %v2391_v15, %v1754_v2  ;;  %1790 = sbr.rel (%p2107_p8) target bundleno = 2726 (0xaa6), region = 100 }
 0xaa1   : > { %v1778_v18 = vmul.f32 %v2105_v12, %v1770_v17 }
 0xaa3   : > { %v1786_v19 = vadd.f32 %v2106_v14, %v1778_v18 }
 0xaa4   : > { %1791 = vst.msk [vmem:[#allocation2] sm:$0xff] %vm909_vm4, %v1785_v16 }
 0xaa5   : > { %1792 = vst.msk [vmem:[#allocation2 + $0x8] sm:$0xff] %vm909_vm4, %v1786_v19 }
 0xaa6 PF: > { %s2931_s19 = sld [smem:[#allocation3_spill]] }
 0xaac   : > { %p2108_p9 = scmp.ne.s32.totalorder %s2931_s19, 1 }
 0xaad   : > { %s2932_s4 = sld [smem:[#allocation17_spill]] (!%p2108_p9) }
 0xaae   : > { %1796 = sbr.rel (%p2108_p9) target bundleno = 2948 (0xb84), region = 104  ;;  %s2933_s2 = sld [smem:[#allocation18_spill]] (!%p2108_p9) }
 0xab3   : > { %v2392_v20 = vld [vmem:[%s2932_s4 + $0x8] sm:$0xff]   ;;  %v2452_v21 = vmov 0.0   ;;  %v2393_v22 = vld [vmem:[%s2932_s4] sm:$0xff]   ;;  %vm2453_vm9 = vmmov 0   ;;  %v1801_v23 = vpack.c.bf16 %v1786_v19, %v1785_v16 }
 0xab4   : > { %2255 = vmatprep.subr.bf16.mxu0 %v2452_v21  ;;  %2259 = vmatprep.mubr.msk.bf16.mxu0 %vm2453_vm9, %v2452_v21  ;;  %v2109_v25 = vld [vmem:[%s2933_s2] ss:$0 sm:$0xff] }
 0xab5   : > { %2256 = vmatpush3.bf16.msra.mxu0 %v2392_v20 }
 0xab6   : > { %2257 = vmatprep.subr.bf16.mxu0 %v2452_v21 }
 0xab9   : > { %2258 = vmatpush3.bf16.msra.mxu0 %v2393_v22 }
 0xabc   : > { %2260 = vmatmul.mubr.msk.bf16.vlgmr.msra.gmra.mxu0 %vm909_vm4, %v1801_v23 }
 0xb7c   : > { %v1858_v28 = vpop.f32.mrf.mxu0 }
 0xb7d   : > { %v1859_v29 = vadd.f32 %v2109_v25, %v1858_v28 }
 0xb7e   : > { %v2261_v30 = vpop.f32.mrf.mxu0 }
 0xb7f   : > { %1865 = vst.msk [vmem:[%s2647_s0] sm:$0xff] %vm1696_vm8, %v1859_v29 }
 0xb80   : > { %v1861_v31 = vpop.f32.mrf.mxu0 }
 0xb81   : > { %v1862_v32 = vadd.f32 %v2109_v25, %v1861_v31 }
 0xb82   : > { %v2262_v33 = vpop.f32.mrf.mxu0 }
 0xb83   : > { %1866 = vst.msk [vmem:[%s2647_s0 + $0x8] sm:$0xff] %vm1696_vm8, %v1862_v32 }
 0xb84 PF: > { %s2934_s1 = sld [smem:[#allocation6_spill]] }
 0xb85   : > { %s2935_s27 = sld [smem:[#allocation4_spill]] }
 0xb86   : > { %s2936_s28 = sld [smem:[#allocation5_spill]] }
 0xb87   : > { %s2937_s29 = sld [smem:[#allocation7_spill]] }
 0xb88   : > { %s2938_s30 = sld [smem:[#allocation8_spill]] }
 0xb8a   : > { %s28_s0 = sadd.s32 1, %s2934_s1  }
 0xb8b   : > { %p25_p10 = scmp.ge.s32.totalorder %s28_s0, 6  }
 0xb8d   :  { %27 = sbr.rel (!%p25_p10) target bundleno = 9 (0x9), region = 170 }

</bundles_post_ra>
